<compile_context>
chip_gen: v6e
topology: v6e:2x2x1
jax: 0.10.0
libtpu: 0.0.40
codegen_flags: <defaults>
</compile_context>

<pallas_src>
import jax
import jax.numpy as jnp
from jax import lax
from jax.experimental import pallas as pl
from jax.experimental.pallas import tpu as pltpu
import numpy as np

HIDDEN_SIZE = 64
H_PAD = 128            # hidden state padded to one full f32 vreg of lanes
GATE_W = 4 * H_PAD     # PyTorch gate order [i, f, g, o], each block 128-lane aligned


def _round_up(n, m):
    return ((n + m - 1) // m) * m


def _lstm_predictor_kernel(x_ref,     # (T, Bt, 1)      f32, time-major scalar inputs
                           wih_ref,   # (1, GATE_W)     f32  (W_ih row, gate-padded)
                           b_ref,     # (1, GATE_W)     f32  (b_ih + b_hh, gate-padded)
                           whh_ref,   # (H_PAD, GATE_W) bf16 (W_hh^T, zero-padded)
                           wlin_ref,  # (H_PAD, O)      f32  (W_lin^T, zero-padded rows)
                           blin_ref,  # (1, O)          f32
                           out_ref,   # (Bt, O)         f32
                           gx_ref):   # (T, Bt, GATE_W) f32 scratch
    T, Bt, _ = x_ref.shape
    Hp = whh_ref.shape[0]

    # Hoisted input projection for ALL timesteps. Since input_size == 1 this is
    # a pure VPU broadcast-multiply (outer product) + bias add: no MXU work and
    # nothing left of it on the per-step critical path.
    gx_ref[...] = x_ref[...] * wih_ref[...] + b_ref[...]

    def step(t, carry):
        h, c = carry                                   # (Bt, Hp) f32 each
        # single MXU op on the serial critical path; bf16 operands, f32 accumulate
        gates = gx_ref[t] + jnp.dot(h.astype(jnp.bfloat16), whh_ref[...],
                                    preferred_element_type=jnp.float32)
        # every slice below is exactly whole vregs (128-lane aligned)
        i_g = jax.nn.sigmoid(gates[:, 0 * Hp:1 * Hp])
        f_g = jax.nn.sigmoid(gates[:, 1 * Hp:2 * Hp])
        g_g = jnp.tanh(gates[:, 2 * Hp:3 * Hp])
        o_g = jax.nn.sigmoid(gates[:, 3 * Hp:4 * Hp])
        c_new = f_g * c + i_g * g_g
        h_new = o_g * jnp.tanh(c_new)
        return h_new, c_new

    h0 = jnp.zeros((Bt, Hp), jnp.float32)
    c0 = jnp.zeros((Bt, Hp), jnp.float32)
    unroll = True if T <= 32 else 8
    h_last, _ = lax.fori_loop(0, T, step, (h0, c0), unroll=unroll)

    # Final linear layer on the last hidden state (padded rows of W_lin are 0).
    out_ref[...] = (jnp.dot(h_last, wlin_ref[...],
                            preferred_element_type=jnp.float32) + blin_ref[...])


@jax.jit
def stock_predictor_forward(x, w_ih, w_hh, b_ih, b_hh, w_lin, b_lin):
    """x: (B, T, 1) float32, batch_first like the PyTorch module. Returns (B, 1)."""
    B, T, I = x.shape
    H = w_hh.shape[1]
    O = w_lin.shape[0]
    assert I == 1, "StockPredictor uses input_size=1"
    assert H == HIDDEN_SIZE

    Hp, GW = H_PAD, GATE_W
    f32 = jnp.float32

    B_tile = min(_round_up(B, 8), 128)       # sublane-aligned batch tile
    B_pad = _round_up(B, B_tile)
    nb = B_pad // B_tile

    # --- layout glue (XLA side): time-major x, batch padded to B_pad ---------
    x_tm = jnp.transpose(x.astype(f32), (1, 0, 2))                 # (T, B, 1)
    x_tm = jnp.pad(x_tm, ((0, 0), (0, B_pad - B), (0, 0)))         # (T, B_pad, 1)

    # Place each PyTorch gate block [i, f, g, o] (width H) at a 128-lane-aligned
    # column so every in-kernel gate slice is exactly whole vregs. Padded
    # columns/rows are zero -> padded lanes of gates/h/c stay exactly zero.
    def pad_gate_cols(m):                                          # (r, 4H) -> (r, GW)
        out = jnp.zeros((m.shape[0], GW), f32)
        for g in range(4):
            out = out.at[:, g * Hp:g * Hp + H].set(m[:, g * H:(g + 1) * H])
        return out

    wih_row = pad_gate_cols(w_ih.T.astype(f32))                    # (1, GW)
    bias = pad_gate_cols((b_ih + b_hh).reshape(1, 4 * H).astype(f32))
    whh_p = jnp.zeros((Hp, GW), f32).at[:H].set(pad_gate_cols(w_hh.T.astype(f32)))
    whh_p = whh_p.astype(jnp.bfloat16)                             # MXU-native weights
    wlin_p = jnp.zeros((Hp, O), f32).at[:H].set(w_lin.T.astype(f32))
    blin = b_lin.reshape(1, O).astype(f32)

    # Explicit VMEM budget (v7x scoped default is 32 of 64 MiB).
    est = (2 * T * B_tile * 128 * 4                  # double-buffered x block (lane-padded)
           + T * B_tile * GW * 4                     # gates_x scratch
           + 2 * (Hp * GW * 2 + 2 * GW * 4 + Hp * 128 * 4 + 128 * 4)   # weights / biases
           + 2 * B_tile * 128 * 4)                   # out block (lane-padded)
    vmem_limit = int(min(96 * 2 ** 20, max(16 * 2 ** 20, est + (4 << 20))))

    out = pl.pallas_call(
        _lstm_predictor_kernel,
        out_shape=jax.ShapeDtypeStruct((B_pad, O), f32),
        grid_spec=pltpu.PrefetchScalarGridSpec(
            num_scalar_prefetch=0,
            grid=(nb,),                              # batch tiles: embarrassingly parallel
            in_specs=[
                pl.BlockSpec((T, B_tile, 1), lambda i: (0, i, 0)),
                pl.BlockSpec((1, GW), lambda i: (0, 0)),
                pl.BlockSpec((1, GW), lambda i: (0, 0)),
                pl.BlockSpec((Hp, GW), lambda i: (0, 0)),
                pl.BlockSpec((Hp, O), lambda i: (0, 0)),
                pl.BlockSpec((1, O), lambda i: (0, 0)),
            ],
            out_specs=pl.BlockSpec((B_tile, O), lambda i: (i, 0)),
            # TODO(synk): for large T, add a second ("arbitrary") grid axis over
            # time chunks with h/c carried in VMEM scratch so gates_x is pipelined
            # instead of fully resident.
            scratch_shapes=[pltpu.VMEM((T, B_tile, GW), jnp.float32)],
        ),
        compiler_params=pltpu.CompilerParams(
            dimension_semantics=("parallel",),
            vmem_limit_bytes=vmem_limit,
        ),
    )(x_tm, wih_row, bias, whh_p, wlin_p, blin)
    return out[:B]


def _reference_forward(x, w_ih, w_hh, b_ih, b_hh, w_lin, b_lin):
    """Pure-JAX f32 reference mirroring torch.nn.LSTM + Linear."""
    B, T, _ = x.shape
    H = w_hh.shape[1]
    h = jnp.zeros((B, H), jnp.float32)
    c = jnp.zeros((B, H), jnp.float32)
    for t in range(T):
        gates = x[:, t, :] @ w_ih.T + h @ w_hh.T + b_ih + b_hh
        i_g = jax.nn.sigmoid(gates[:, 0 * H:1 * H])
        f_g = jax.nn.sigmoid(gates[:, 1 * H:2 * H])
        g_g = jnp.tanh(gates[:, 2 * H:3 * H])
        o_g = jax.nn.sigmoid(gates[:, 3 * H:4 * H])
        c = f_g * c + i_g * g_g
        h = o_g * jnp.tanh(c)
    return h @ w_lin.T + b_lin


if __name__ == "__main__":
    key = jax.random.PRNGKey(0)
    B, T, I, H, O = 2, 8, 1, HIDDEN_SIZE, 1

    # Deterministic parameter init (PyTorch-style U(-1/sqrt(H), 1/sqrt(H))).
    ks = jax.random.split(key, 8)
    bound = 1.0 / np.sqrt(H)
    w_ih = jax.random.uniform(ks[0], (4 * H, I), jnp.float32, -bound, bound)
    w_hh = jax.random.uniform(ks[1], (4 * H, H), jnp.float32, -bound, bound)
    b_ih = jax.random.uniform(ks[2], (4 * H,), jnp.float32, -bound, bound)
    b_hh = jax.random.uniform(ks[3], (4 * H,), jnp.float32, -bound, bound)
    w_lin = jax.random.uniform(ks[4], (O, H), jnp.float32, -bound, bound)
    b_lin = jax.random.uniform(ks[5], (O,), jnp.float32, -bound, bound)

    x = jax.random.normal(ks[6], (B, T, I), jnp.float32)

    y = stock_predictor_forward(x, w_ih, w_hh, b_ih, b_hh, w_lin, b_lin)
    y = jax.block_until_ready(y)

    y_ref = _reference_forward(x, w_ih, w_hh, b_ih, b_hh, w_lin, b_lin)
    # bf16 W_hh on the MXU -> looser tolerance than a pure-f32 comparison.
    np.testing.assert_allclose(np.asarray(y), np.asarray(y_ref), rtol=2e-2, atol=5e-3)

    print("KERNEL_OK")
</pallas_src>

<mosaic_0001>
module attributes {stable_mosaic.version = 11 : i64} {
  func.func @_lstm_predictor_kernel(%arg0: i32, %arg1: memref<8x8x1xf32, #tpu.memory_space<vmem>>, %arg2: memref<1x512xf32, #tpu.memory_space<vmem>>, %arg3: memref<1x512xf32, #tpu.memory_space<vmem>>, %arg4: memref<128x512xbf16, #tpu.memory_space<vmem>>, %arg5: memref<128x1xf32, #tpu.memory_space<vmem>>, %arg6: memref<1x1xf32, #tpu.memory_space<vmem>>, %arg7: memref<8x1xf32, #tpu.memory_space<vmem>>, %arg8: memref<8x8x512xf32, #tpu.memory_space<vmem>>) attributes {dimension_semantics = [#tpu.dimension_semantics<parallel>], iteration_bounds = array<i64: 1>, scalar_prefetch = 0 : i64, scratch_operands = 1 : i64, tpu.core_type = #tpu.core_type<tc>, window_params = [{transform_indices = @transform_0, window_bounds = array<i64: 8, 8, 1>}, {pipeline_mode = #tpu.pipeline_mode<synchronous>, transform_indices = @transform_1, window_bounds = array<i64: 1, 512>}, {pipeline_mode = #tpu.pipeline_mode<synchronous>, transform_indices = @transform_2, window_bounds = array<i64: 1, 512>}, {pipeline_mode = #tpu.pipeline_mode<synchronous>, transform_indices = @transform_3, window_bounds = array<i64: 128, 512>}, {pipeline_mode = #tpu.pipeline_mode<synchronous>, transform_indices = @transform_4, window_bounds = array<i64: 128, 1>}, {pipeline_mode = #tpu.pipeline_mode<synchronous>, transform_indices = @transform_5, window_bounds = array<i64: 1, 1>}, {transform_indices = @transform_6, window_bounds = array<i64: 8, 1>}]} {
    %c0 = arith.constant 0 : index
    %c0_0 = arith.constant 0 : index
    %c0_1 = arith.constant 0 : index
    %0 = vector.load %arg1[%c0, %c0_0, %c0_1] : memref<8x8x1xf32, #tpu.memory_space<vmem>>, vector<8x8x1xf32>
    %c0_2 = arith.constant 0 : index
    %c0_3 = arith.constant 0 : index
    %1 = vector.load %arg2[%c0_2, %c0_3] : memref<1x512xf32, #tpu.memory_space<vmem>>, vector<1x512xf32>
    %2 = vector.shape_cast %1 : vector<1x512xf32> to vector<1x1x512xf32>
    %3 = vector.broadcast %0 : vector<8x8x1xf32> to vector<8x8x512xf32>
    %4 = vector.broadcast %2 : vector<1x1x512xf32> to vector<8x8x512xf32>
    %5 = arith.mulf %3, %4 : vector<8x8x512xf32>
    %c0_4 = arith.constant 0 : index
    %c0_5 = arith.constant 0 : index
    %6 = vector.load %arg3[%c0_4, %c0_5] : memref<1x512xf32, #tpu.memory_space<vmem>>, vector<1x512xf32>
    %7 = vector.shape_cast %6 : vector<1x512xf32> to vector<1x1x512xf32>
    %8 = vector.broadcast %7 : vector<1x1x512xf32> to vector<8x8x512xf32>
    %9 = arith.addf %5, %8 : vector<8x8x512xf32>
    %c0_6 = arith.constant 0 : index
    %c0_7 = arith.constant 0 : index
    %c0_8 = arith.constant 0 : index
    %10 = vector.load %arg8[%c0_6, %c0_7, %c0_8] : memref<8x8x512xf32, #tpu.memory_space<vmem>>, vector<8x8x512xf32>
    tpu.vector_store %arg8[%c0_6, %c0_7, %c0_8], %9 {strides = array<i32>} : memref<8x8x512xf32, #tpu.memory_space<vmem>>, vector<8x8x512xf32>,
    %cst = arith.constant 0.000000e+00 : f32
    %11 = vector.broadcast %cst : f32 to vector<8x128xf32>
    %cst_9 = arith.constant 0.000000e+00 : f32
    %12 = vector.broadcast %cst_9 : f32 to vector<8x128xf32>
    %c0_i32 = arith.constant 0 : i32
    %13 = arith.index_cast %c0_i32 : i32 to index
    %c0_10 = arith.constant 0 : index
    %c0_11 = arith.constant 0 : index
    %14 = vector.load %arg8[%13, %c0_10, %c0_11] : memref<8x8x512xf32, #tpu.memory_space<vmem>>, vector<1x8x512xf32>
    %15 = vector.shape_cast %14 : vector<1x8x512xf32> to vector<8x512xf32>
    %16 = arith.truncf %11 : vector<8x128xf32> to vector<8x128xbf16>
    %c0_12 = arith.constant 0 : index
    %c0_13 = arith.constant 0 : index
    %17 = vector.load %arg4[%c0_12, %c0_13] : memref<128x512xbf16, #tpu.memory_space<vmem>>, vector<128x512xbf16>
    %cst_14 = arith.constant dense<0.000000e+00> : vector<8x512xf32>
    %18 = tpu.matmul %16, %17, %cst_14 {dimension_numbers = #tpu.dot_dimension_numbers<[1], [0], [0], [1], [0, 0, 1, 1], [], []>} : vector<8x128xbf16>, vector<128x512xbf16>, vector<8x512xf32> -> vector<8x512xf32>
    %19 = arith.addf %15, %18 : vector<8x512xf32>
    %20 = vector.extract_strided_slice %19 {offsets = [0, 0], sizes = [8, 128], strides = [1, 1]} : vector<8x512xf32> to vector<8x128xf32>
    %21 = arith.negf %20 : vector<8x128xf32>
    %22 = math.exp %21 : vector<8x128xf32>
    %cst_15 = arith.constant 1.000000e+00 : f32
    %23 = vector.broadcast %cst_15 : f32 to vector<8x128xf32>
    %24 = arith.addf %23, %22 : vector<8x128xf32>
    %25 = arith.divf %23, %24 : vector<8x128xf32>
    %26 = vector.extract_strided_slice %19 {offsets = [0, 128], sizes = [8, 128], strides = [1, 1]} : vector<8x512xf32> to vector<8x128xf32>
    %27 = arith.negf %26 : vector<8x128xf32>
    %28 = math.exp %27 : vector<8x128xf32>
    %cst_16 = arith.constant 1.000000e+00 : f32
    %29 = vector.broadcast %cst_16 : f32 to vector<8x128xf32>
    %30 = arith.addf %29, %28 : vector<8x128xf32>
    %31 = arith.divf %29, %30 : vector<8x128xf32>
    %32 = vector.extract_strided_slice %19 {offsets = [0, 256], sizes = [8, 128], strides = [1, 1]} : vector<8x512xf32> to vector<8x128xf32>
    %33 = math.tanh %32 : vector<8x128xf32>
    %34 = vector.extract_strided_slice %19 {offsets = [0, 384], sizes = [8, 128], strides = [1, 1]} : vector<8x512xf32> to vector<8x128xf32>
    %35 = arith.negf %34 : vector<8x128xf32>
    %36 = math.exp %35 : vector<8x128xf32>
    %cst_17 = arith.constant 1.000000e+00 : f32
    %37 = vector.broadcast %cst_17 : f32 to vector<8x128xf32>
    %38 = arith.addf %37, %36 : vector<8x128xf32>
    %39 = arith.divf %37, %38 : vector<8x128xf32>
    %40 = arith.mulf %31, %12 : vector<8x128xf32>
    %41 = arith.mulf %25, %33 : vector<8x128xf32>
    %42 = arith.addf %40, %41 : vector<8x128xf32>
    %43 = math.tanh %42 : vector<8x128xf32>
    %44 = arith.mulf %39, %43 : vector<8x128xf32>
    %c1_i32 = arith.constant 1 : i32
    %45 = arith.index_cast %c1_i32 : i32 to index
    %c0_18 = arith.constant 0 : index
    %c0_19 = arith.constant 0 : index
    %46 = vector.load %arg8[%45, %c0_18, %c0_19] : memref<8x8x512xf32, #tpu.memory_space<vmem>>, vector<1x8x512xf32>
    %47 = vector.shape_cast %46 : vector<1x8x512xf32> to vector<8x512xf32>
    %48 = arith.truncf %44 : vector<8x128xf32> to vector<8x128xbf16>
    %c0_20 = arith.constant 0 : index
    %c0_21 = arith.constant 0 : index
    %49 = vector.load %arg4[%c0_20, %c0_21] : memref<128x512xbf16, #tpu.memory_space<vmem>>, vector<128x512xbf16>
    %cst_22 = arith.constant dense<0.000000e+00> : vector<8x512xf32>
    %50 = tpu.matmul %48, %49, %cst_22 {dimension_numbers = #tpu.dot_dimension_numbers<[1], [0], [0], [1], [0, 0, 1, 1], [], []>} : vector<8x128xbf16>, vector<128x512xbf16>, vector<8x512xf32> -> vector<8x512xf32>
    %51 = arith.addf %47, %50 : vector<8x512xf32>
    %52 = vector.extract_strided_slice %51 {offsets = [0, 0], sizes = [8, 128], strides = [1, 1]} : vector<8x512xf32> to vector<8x128xf32>
    %53 = arith.negf %52 : vector<8x128xf32>
    %54 = math.exp %53 : vector<8x128xf32>
    %cst_23 = arith.constant 1.000000e+00 : f32
    %55 = vector.broadcast %cst_23 : f32 to vector<8x128xf32>
    %56 = arith.addf %55, %54 : vector<8x128xf32>
    %57 = arith.divf %55, %56 : vector<8x128xf32>
    %58 = vector.extract_strided_slice %51 {offsets = [0, 128], sizes = [8, 128], strides = [1, 1]} : vector<8x512xf32> to vector<8x128xf32>
    %59 = arith.negf %58 : vector<8x128xf32>
    %60 = math.exp %59 : vector<8x128xf32>
    %cst_24 = arith.constant 1.000000e+00 : f32
    %61 = vector.broadcast %cst_24 : f32 to vector<8x128xf32>
    %62 = arith.addf %61, %60 : vector<8x128xf32>
    %63 = arith.divf %61, %62 : vector<8x128xf32>
    %64 = vector.extract_strided_slice %51 {offsets = [0, 256], sizes = [8, 128], strides = [1, 1]} : vector<8x512xf32> to vector<8x128xf32>
    %65 = math.tanh %64 : vector<8x128xf32>
    %66 = vector.extract_strided_slice %51 {offsets = [0, 384], sizes = [8, 128], strides = [1, 1]} : vector<8x512xf32> to vector<8x128xf32>
    %67 = arith.negf %66 : vector<8x128xf32>
    %68 = math.exp %67 : vector<8x128xf32>
    %cst_25 = arith.constant 1.000000e+00 : f32
    %69 = vector.broadcast %cst_25 : f32 to vector<8x128xf32>
    %70 = arith.addf %69, %68 : vector<8x128xf32>
    %71 = arith.divf %69, %70 : vector<8x128xf32>
    %72 = arith.mulf %63, %42 : vector<8x128xf32>
    %73 = arith.mulf %57, %65 : vector<8x128xf32>
    %74 = arith.addf %72, %73 : vector<8x128xf32>
    %75 = math.tanh %74 : vector<8x128xf32>
    %76 = arith.mulf %71, %75 : vector<8x128xf32>
    %c2_i32 = arith.constant 2 : i32
    %77 = arith.index_cast %c2_i32 : i32 to index
    %c0_26 = arith.constant 0 : index
    %c0_27 = arith.constant 0 : index
    %78 = vector.load %arg8[%77, %c0_26, %c0_27] : memref<8x8x512xf32, #tpu.memory_space<vmem>>, vector<1x8x512xf32>
    %79 = vector.shape_cast %78 : vector<1x8x512xf32> to vector<8x512xf32>
    %80 = arith.truncf %76 : vector<8x128xf32> to vector<8x128xbf16>
    %c0_28 = arith.constant 0 : index
    %c0_29 = arith.constant 0 : index
    %81 = vector.load %arg4[%c0_28, %c0_29] : memref<128x512xbf16, #tpu.memory_space<vmem>>, vector<128x512xbf16>
    %cst_30 = arith.constant dense<0.000000e+00> : vector<8x512xf32>
    %82 = tpu.matmul %80, %81, %cst_30 {dimension_numbers = #tpu.dot_dimension_numbers<[1], [0], [0], [1], [0, 0, 1, 1], [], []>} : vector<8x128xbf16>, vector<128x512xbf16>, vector<8x512xf32> -> vector<8x512xf32>
    %83 = arith.addf %79, %82 : vector<8x512xf32>
    %84 = vector.extract_strided_slice %83 {offsets = [0, 0], sizes = [8, 128], strides = [1, 1]} : vector<8x512xf32> to vector<8x128xf32>
    %85 = arith.negf %84 : vector<8x128xf32>
    %86 = math.exp %85 : vector<8x128xf32>
    %cst_31 = arith.constant 1.000000e+00 : f32
    %87 = vector.broadcast %cst_31 : f32 to vector<8x128xf32>
    %88 = arith.addf %87, %86 : vector<8x128xf32>
    %89 = arith.divf %87, %88 : vector<8x128xf32>
    %90 = vector.extract_strided_slice %83 {offsets = [0, 128], sizes = [8, 128], strides = [1, 1]} : vector<8x512xf32> to vector<8x128xf32>
    %91 = arith.negf %90 : vector<8x128xf32>
    %92 = math.exp %91 : vector<8x128xf32>
    %cst_32 = arith.constant 1.000000e+00 : f32
    %93 = vector.broadcast %cst_32 : f32 to vector<8x128xf32>
    %94 = arith.addf %93, %92 : vector<8x128xf32>
    %95 = arith.divf %93, %94 : vector<8x128xf32>
    %96 = vector.extract_strided_slice %83 {offsets = [0, 256], sizes = [8, 128], strides = [1, 1]} : vector<8x512xf32> to vector<8x128xf32>
    %97 = math.tanh %96 : vector<8x128xf32>
    %98 = vector.extract_strided_slice %83 {offsets = [0, 384], sizes = [8, 128], strides = [1, 1]} : vector<8x512xf32> to vector<8x128xf32>
    %99 = arith.negf %98 : vector<8x128xf32>
    %100 = math.exp %99 : vector<8x128xf32>
    %cst_33 = arith.constant 1.000000e+00 : f32
    %101 = vector.broadcast %cst_33 : f32 to vector<8x128xf32>
    %102 = arith.addf %101, %100 : vector<8x128xf32>
    %103 = arith.divf %101, %102 : vector<8x128xf32>
    %104 = arith.mulf %95, %74 : vector<8x128xf32>
    %105 = arith.mulf %89, %97 : vector<8x128xf32>
    %106 = arith.addf %104, %105 : vector<8x128xf32>
    %107 = math.tanh %106 : vector<8x128xf32>
    %108 = arith.mulf %103, %107 : vector<8x128xf32>
    %c3_i32 = arith.constant 3 : i32
    %109 = arith.index_cast %c3_i32 : i32 to index
    %c0_34 = arith.constant 0 : index
    %c0_35 = arith.constant 0 : index
    %110 = vector.load %arg8[%109, %c0_34, %c0_35] : memref<8x8x512xf32, #tpu.memory_space<vmem>>, vector<1x8x512xf32>
    %111 = vector.shape_cast %110 : vector<1x8x512xf32> to vector<8x512xf32>
    %112 = arith.truncf %108 : vector<8x128xf32> to vector<8x128xbf16>
    %c0_36 = arith.constant 0 : index
    %c0_37 = arith.constant 0 : index
    %113 = vector.load %arg4[%c0_36, %c0_37] : memref<128x512xbf16, #tpu.memory_space<vmem>>, vector<128x512xbf16>
    %cst_38 = arith.constant dense<0.000000e+00> : vector<8x512xf32>
    %114 = tpu.matmul %112, %113, %cst_38 {dimension_numbers = #tpu.dot_dimension_numbers<[1], [0], [0], [1], [0, 0, 1, 1], [], []>} : vector<8x128xbf16>, vector<128x512xbf16>, vector<8x512xf32> -> vector<8x512xf32>
    %115 = arith.addf %111, %114 : vector<8x512xf32>
    %116 = vector.extract_strided_slice %115 {offsets = [0, 0], sizes = [8, 128], strides = [1, 1]} : vector<8x512xf32> to vector<8x128xf32>
    %117 = arith.negf %116 : vector<8x128xf32>
    %118 = math.exp %117 : vector<8x128xf32>
    %cst_39 = arith.constant 1.000000e+00 : f32
    %119 = vector.broadcast %cst_39 : f32 to vector<8x128xf32>
    %120 = arith.addf %119, %118 : vector<8x128xf32>
    %121 = arith.divf %119, %120 : vector<8x128xf32>
    %122 = vector.extract_strided_slice %115 {offsets = [0, 128], sizes = [8, 128], strides = [1, 1]} : vector<8x512xf32> to vector<8x128xf32>
    %123 = arith.negf %122 : vector<8x128xf32>
    %124 = math.exp %123 : vector<8x128xf32>
    %cst_40 = arith.constant 1.000000e+00 : f32
    %125 = vector.broadcast %cst_40 : f32 to vector<8x128xf32>
    %126 = arith.addf %125, %124 : vector<8x128xf32>
    %127 = arith.divf %125, %126 : vector<8x128xf32>
    %128 = vector.extract_strided_slice %115 {offsets = [0, 256], sizes = [8, 128], strides = [1, 1]} : vector<8x512xf32> to vector<8x128xf32>
    %129 = math.tanh %128 : vector<8x128xf32>
    %130 = vector.extract_strided_slice %115 {offsets = [0, 384], sizes = [8, 128], strides = [1, 1]} : vector<8x512xf32> to vector<8x128xf32>
    %131 = arith.negf %130 : vector<8x128xf32>
    %132 = math.exp %131 : vector<8x128xf32>
    %cst_41 = arith.constant 1.000000e+00 : f32
    %133 = vector.broadcast %cst_41 : f32 to vector<8x128xf32>
    %134 = arith.addf %133, %132 : vector<8x128xf32>
    %135 = arith.divf %133, %134 : vector<8x128xf32>
    %136 = arith.mulf %127, %106 : vector<8x128xf32>
    %137 = arith.mulf %121, %129 : vector<8x128xf32>
    %138 = arith.addf %136, %137 : vector<8x128xf32>
    %139 = math.tanh %138 : vector<8x128xf32>
    %140 = arith.mulf %135, %139 : vector<8x128xf32>
    %c4_i32 = arith.constant 4 : i32
    %141 = arith.index_cast %c4_i32 : i32 to index
    %c0_42 = arith.constant 0 : index
    %c0_43 = arith.constant 0 : index
    %142 = vector.load %arg8[%141, %c0_42, %c0_43] : memref<8x8x512xf32, #tpu.memory_space<vmem>>, vector<1x8x512xf32>
    %143 = vector.shape_cast %142 : vector<1x8x512xf32> to vector<8x512xf32>
    %144 = arith.truncf %140 : vector<8x128xf32> to vector<8x128xbf16>
    %c0_44 = arith.constant 0 : index
    %c0_45 = arith.constant 0 : index
    %145 = vector.load %arg4[%c0_44, %c0_45] : memref<128x512xbf16, #tpu.memory_space<vmem>>, vector<128x512xbf16>
    %cst_46 = arith.constant dense<0.000000e+00> : vector<8x512xf32>
    %146 = tpu.matmul %144, %145, %cst_46 {dimension_numbers = #tpu.dot_dimension_numbers<[1], [0], [0], [1], [0, 0, 1, 1], [], []>} : vector<8x128xbf16>, vector<128x512xbf16>, vector<8x512xf32> -> vector<8x512xf32>
    %147 = arith.addf %143, %146 : vector<8x512xf32>
    %148 = vector.extract_strided_slice %147 {offsets = [0, 0], sizes = [8, 128], strides = [1, 1]} : vector<8x512xf32> to vector<8x128xf32>
    %149 = arith.negf %148 : vector<8x128xf32>
    %150 = math.exp %149 : vector<8x128xf32>
    %cst_47 = arith.constant 1.000000e+00 : f32
    %151 = vector.broadcast %cst_47 : f32 to vector<8x128xf32>
    %152 = arith.addf %151, %150 : vector<8x128xf32>
    %153 = arith.divf %151, %152 : vector<8x128xf32>
    %154 = vector.extract_strided_slice %147 {offsets = [0, 128], sizes = [8, 128], strides = [1, 1]} : vector<8x512xf32> to vector<8x128xf32>
    %155 = arith.negf %154 : vector<8x128xf32>
    %156 = math.exp %155 : vector<8x128xf32>
    %cst_48 = arith.constant 1.000000e+00 : f32
    %157 = vector.broadcast %cst_48 : f32 to vector<8x128xf32>
    %158 = arith.addf %157, %156 : vector<8x128xf32>
    %159 = arith.divf %157, %158 : vector<8x128xf32>
    %160 = vector.extract_strided_slice %147 {offsets = [0, 256], sizes = [8, 128], strides = [1, 1]} : vector<8x512xf32> to vector<8x128xf32>
    %161 = math.tanh %160 : vector<8x128xf32>
    %162 = vector.extract_strided_slice %147 {offsets = [0, 384], sizes = [8, 128], strides = [1, 1]} : vector<8x512xf32> to vector<8x128xf32>
    %163 = arith.negf %162 : vector<8x128xf32>
    %164 = math.exp %163 : vector<8x128xf32>
    %cst_49 = arith.constant 1.000000e+00 : f32
    %165 = vector.broadcast %cst_49 : f32 to vector<8x128xf32>
    %166 = arith.addf %165, %164 : vector<8x128xf32>
    %167 = arith.divf %165, %166 : vector<8x128xf32>
    %168 = arith.mulf %159, %138 : vector<8x128xf32>
    %169 = arith.mulf %153, %161 : vector<8x128xf32>
    %170 = arith.addf %168, %169 : vector<8x128xf32>
    %171 = math.tanh %170 : vector<8x128xf32>
    %172 = arith.mulf %167, %171 : vector<8x128xf32>
    %c5_i32 = arith.constant 5 : i32
    %173 = arith.index_cast %c5_i32 : i32 to index
    %c0_50 = arith.constant 0 : index
    %c0_51 = arith.constant 0 : index
    %174 = vector.load %arg8[%173, %c0_50, %c0_51] : memref<8x8x512xf32, #tpu.memory_space<vmem>>, vector<1x8x512xf32>
    %175 = vector.shape_cast %174 : vector<1x8x512xf32> to vector<8x512xf32>
    %176 = arith.truncf %172 : vector<8x128xf32> to vector<8x128xbf16>
    %c0_52 = arith.constant 0 : index
    %c0_53 = arith.constant 0 : index
    %177 = vector.load %arg4[%c0_52, %c0_53] : memref<128x512xbf16, #tpu.memory_space<vmem>>, vector<128x512xbf16>
    %cst_54 = arith.constant dense<0.000000e+00> : vector<8x512xf32>
    %178 = tpu.matmul %176, %177, %cst_54 {dimension_numbers = #tpu.dot_dimension_numbers<[1], [0], [0], [1], [0, 0, 1, 1], [], []>} : vector<8x128xbf16>, vector<128x512xbf16>, vector<8x512xf32> -> vector<8x512xf32>
    %179 = arith.addf %175, %178 : vector<8x512xf32>
    %180 = vector.extract_strided_slice %179 {offsets = [0, 0], sizes = [8, 128], strides = [1, 1]} : vector<8x512xf32> to vector<8x128xf32>
    %181 = arith.negf %180 : vector<8x128xf32>
    %182 = math.exp %181 : vector<8x128xf32>
    %cst_55 = arith.constant 1.000000e+00 : f32
    %183 = vector.broadcast %cst_55 : f32 to vector<8x128xf32>
    %184 = arith.addf %183, %182 : vector<8x128xf32>
    %185 = arith.divf %183, %184 : vector<8x128xf32>
    %186 = vector.extract_strided_slice %179 {offsets = [0, 128], sizes = [8, 128], strides = [1, 1]} : vector<8x512xf32> to vector<8x128xf32>
    %187 = arith.negf %186 : vector<8x128xf32>
    %188 = math.exp %187 : vector<8x128xf32>
    %cst_56 = arith.constant 1.000000e+00 : f32
    %189 = vector.broadcast %cst_56 : f32 to vector<8x128xf32>
    %190 = arith.addf %189, %188 : vector<8x128xf32>
    %191 = arith.divf %189, %190 : vector<8x128xf32>
    %192 = vector.extract_strided_slice %179 {offsets = [0, 256], sizes = [8, 128], strides = [1, 1]} : vector<8x512xf32> to vector<8x128xf32>
    %193 = math.tanh %192 : vector<8x128xf32>
    %194 = vector.extract_strided_slice %179 {offsets = [0, 384], sizes = [8, 128], strides = [1, 1]} : vector<8x512xf32> to vector<8x128xf32>
    %195 = arith.negf %194 : vector<8x128xf32>
    %196 = math.exp %195 : vector<8x128xf32>
    %cst_57 = arith.constant 1.000000e+00 : f32
    %197 = vector.broadcast %cst_57 : f32 to vector<8x128xf32>
    %198 = arith.addf %197, %196 : vector<8x128xf32>
    %199 = arith.divf %197, %198 : vector<8x128xf32>
    %200 = arith.mulf %191, %170 : vector<8x128xf32>
    %201 = arith.mulf %185, %193 : vector<8x128xf32>
    %202 = arith.addf %200, %201 : vector<8x128xf32>
    %203 = math.tanh %202 : vector<8x128xf32>
    %204 = arith.mulf %199, %203 : vector<8x128xf32>
    %c6_i32 = arith.constant 6 : i32
    %205 = arith.index_cast %c6_i32 : i32 to index
    %c0_58 = arith.constant 0 : index
    %c0_59 = arith.constant 0 : index
    %206 = vector.load %arg8[%205, %c0_58, %c0_59] : memref<8x8x512xf32, #tpu.memory_space<vmem>>, vector<1x8x512xf32>
    %207 = vector.shape_cast %206 : vector<1x8x512xf32> to vector<8x512xf32>
    %208 = arith.truncf %204 : vector<8x128xf32> to vector<8x128xbf16>
    %c0_60 = arith.constant 0 : index
    %c0_61 = arith.constant 0 : index
    %209 = vector.load %arg4[%c0_60, %c0_61] : memref<128x512xbf16, #tpu.memory_space<vmem>>, vector<128x512xbf16>
    %cst_62 = arith.constant dense<0.000000e+00> : vector<8x512xf32>
    %210 = tpu.matmul %208, %209, %cst_62 {dimension_numbers = #tpu.dot_dimension_numbers<[1], [0], [0], [1], [0, 0, 1, 1], [], []>} : vector<8x128xbf16>, vector<128x512xbf16>, vector<8x512xf32> -> vector<8x512xf32>
    %211 = arith.addf %207, %210 : vector<8x512xf32>
    %212 = vector.extract_strided_slice %211 {offsets = [0, 0], sizes = [8, 128], strides = [1, 1]} : vector<8x512xf32> to vector<8x128xf32>
    %213 = arith.negf %212 : vector<8x128xf32>
    %214 = math.exp %213 : vector<8x128xf32>
    %cst_63 = arith.constant 1.000000e+00 : f32
    %215 = vector.broadcast %cst_63 : f32 to vector<8x128xf32>
    %216 = arith.addf %215, %214 : vector<8x128xf32>
    %217 = arith.divf %215, %216 : vector<8x128xf32>
    %218 = vector.extract_strided_slice %211 {offsets = [0, 128], sizes = [8, 128], strides = [1, 1]} : vector<8x512xf32> to vector<8x128xf32>
    %219 = arith.negf %218 : vector<8x128xf32>
    %220 = math.exp %219 : vector<8x128xf32>
    %cst_64 = arith.constant 1.000000e+00 : f32
    %221 = vector.broadcast %cst_64 : f32 to vector<8x128xf32>
    %222 = arith.addf %221, %220 : vector<8x128xf32>
    %223 = arith.divf %221, %222 : vector<8x128xf32>
    %224 = vector.extract_strided_slice %211 {offsets = [0, 256], sizes = [8, 128], strides = [1, 1]} : vector<8x512xf32> to vector<8x128xf32>
    %225 = math.tanh %224 : vector<8x128xf32>
    %226 = vector.extract_strided_slice %211 {offsets = [0, 384], sizes = [8, 128], strides = [1, 1]} : vector<8x512xf32> to vector<8x128xf32>
    %227 = arith.negf %226 : vector<8x128xf32>
    %228 = math.exp %227 : vector<8x128xf32>
    %cst_65 = arith.constant 1.000000e+00 : f32
    %229 = vector.broadcast %cst_65 : f32 to vector<8x128xf32>
    %230 = arith.addf %229, %228 : vector<8x128xf32>
    %231 = arith.divf %229, %230 : vector<8x128xf32>
    %232 = arith.mulf %223, %202 : vector<8x128xf32>
    %233 = arith.mulf %217, %225 : vector<8x128xf32>
    %234 = arith.addf %232, %233 : vector<8x128xf32>
    %235 = math.tanh %234 : vector<8x128xf32>
    %236 = arith.mulf %231, %235 : vector<8x128xf32>
    %c7_i32 = arith.constant 7 : i32
    %237 = arith.index_cast %c7_i32 : i32 to index
    %c0_66 = arith.constant 0 : index
    %c0_67 = arith.constant 0 : index
    %238 = vector.load %arg8[%237, %c0_66, %c0_67] : memref<8x8x512xf32, #tpu.memory_space<vmem>>, vector<1x8x512xf32>
    %239 = vector.shape_cast %238 : vector<1x8x512xf32> to vector<8x512xf32>
    %240 = arith.truncf %236 : vector<8x128xf32> to vector<8x128xbf16>
    %c0_68 = arith.constant 0 : index
    %c0_69 = arith.constant 0 : index
    %241 = vector.load %arg4[%c0_68, %c0_69] : memref<128x512xbf16, #tpu.memory_space<vmem>>, vector<128x512xbf16>
    %cst_70 = arith.constant dense<0.000000e+00> : vector<8x512xf32>
    %242 = tpu.matmul %240, %241, %cst_70 {dimension_numbers = #tpu.dot_dimension_numbers<[1], [0], [0], [1], [0, 0, 1, 1], [], []>} : vector<8x128xbf16>, vector<128x512xbf16>, vector<8x512xf32> -> vector<8x512xf32>
    %243 = arith.addf %239, %242 : vector<8x512xf32>
    %244 = vector.extract_strided_slice %243 {offsets = [0, 0], sizes = [8, 128], strides = [1, 1]} : vector<8x512xf32> to vector<8x128xf32>
    %245 = arith.negf %244 : vector<8x128xf32>
    %246 = math.exp %245 : vector<8x128xf32>
    %cst_71 = arith.constant 1.000000e+00 : f32
    %247 = vector.broadcast %cst_71 : f32 to vector<8x128xf32>
    %248 = arith.addf %247, %246 : vector<8x128xf32>
    %249 = arith.divf %247, %248 : vector<8x128xf32>
    %250 = vector.extract_strided_slice %243 {offsets = [0, 128], sizes = [8, 128], strides = [1, 1]} : vector<8x512xf32> to vector<8x128xf32>
    %251 = arith.negf %250 : vector<8x128xf32>
    %252 = math.exp %251 : vector<8x128xf32>
    %cst_72 = arith.constant 1.000000e+00 : f32
    %253 = vector.broadcast %cst_72 : f32 to vector<8x128xf32>
    %254 = arith.addf %253, %252 : vector<8x128xf32>
    %255 = arith.divf %253, %254 : vector<8x128xf32>
    %256 = vector.extract_strided_slice %243 {offsets = [0, 256], sizes = [8, 128], strides = [1, 1]} : vector<8x512xf32> to vector<8x128xf32>
    %257 = math.tanh %256 : vector<8x128xf32>
    %258 = vector.extract_strided_slice %243 {offsets = [0, 384], sizes = [8, 128], strides = [1, 1]} : vector<8x512xf32> to vector<8x128xf32>
    %259 = arith.negf %258 : vector<8x128xf32>
    %260 = math.exp %259 : vector<8x128xf32>
    %cst_73 = arith.constant 1.000000e+00 : f32
    %261 = vector.broadcast %cst_73 : f32 to vector<8x128xf32>
    %262 = arith.addf %261, %260 : vector<8x128xf32>
    %263 = arith.divf %261, %262 : vector<8x128xf32>
    %264 = arith.mulf %255, %234 : vector<8x128xf32>
    %265 = arith.mulf %249, %257 : vector<8x128xf32>
    %266 = arith.addf %264, %265 : vector<8x128xf32>
    %267 = math.tanh %266 : vector<8x128xf32>
    %268 = arith.mulf %263, %267 : vector<8x128xf32>
    %c8_i32 = arith.constant 8 : i32
    %c0_74 = arith.constant 0 : index
    %c0_75 = arith.constant 0 : index
    %269 = vector.load %arg5[%c0_74, %c0_75] : memref<128x1xf32, #tpu.memory_space<vmem>>, vector<128x1xf32>
    %cst_76 = arith.constant dense<0.000000e+00> : vector<8x1xf32>
    %270 = tpu.matmul %268, %269, %cst_76 {dimension_numbers = #tpu.dot_dimension_numbers<[1], [0], [0], [1], [0, 0, 1, 1], [], []>} : vector<8x128xf32>, vector<128x1xf32>, vector<8x1xf32> -> vector<8x1xf32>
    %c0_77 = arith.constant 0 : index
    %c0_78 = arith.constant 0 : index
    %271 = vector.load %arg6[%c0_77, %c0_78] : memref<1x1xf32, #tpu.memory_space<vmem>>, vector<1x1xf32>
    %272 = vector.broadcast %271 : vector<1x1xf32> to vector<8x1xf32>
    %273 = arith.addf %270, %272 : vector<8x1xf32>
    %c0_79 = arith.constant 0 : index
    %c0_80 = arith.constant 0 : index
    %274 = vector.load %arg7[%c0_79, %c0_80] : memref<8x1xf32, #tpu.memory_space<vmem>>, vector<8x1xf32>
    tpu.vector_store %arg7[%c0_79, %c0_80], %273 {strides = array<i32>} : memref<8x1xf32, #tpu.memory_space<vmem>>, vector<8x1xf32>,
    return
  }
  func.func @transform_0(%arg0: i32) -> (i32, i32, i32) {
    %c0_i32 = arith.constant 0 : i32
    %c0_i32_0 = arith.constant 0 : i32
    %c0_i32_1 = arith.constant 0 : i32
    return %c0_i32, %arg0, %c0_i32_0 : i32, i32, i32
  }
  func.func @transform_1(%arg0: i32) -> (i32, i32) {
    %c0_i32 = arith.constant 0 : i32
    %c0_i32_0 = arith.constant 0 : i32
    %c0_i32_1 = arith.constant 0 : i32
    return %c0_i32, %c0_i32_0 : i32, i32
  }
  func.func @transform_2(%arg0: i32) -> (i32, i32) {
    %c0_i32 = arith.constant 0 : i32
    %c0_i32_0 = arith.constant 0 : i32
    %c0_i32_1 = arith.constant 0 : i32
    return %c0_i32, %c0_i32_0 : i32, i32
  }
  func.func @transform_3(%arg0: i32) -> (i32, i32) {
    %c0_i32 = arith.constant 0 : i32
    %c0_i32_0 = arith.constant 0 : i32
    %c0_i32_1 = arith.constant 0 : i32
    return %c0_i32, %c0_i32_0 : i32, i32
  }
  func.func @transform_4(%arg0: i32) -> (i32, i32) {
    %c0_i32 = arith.constant 0 : i32
    %c0_i32_0 = arith.constant 0 : i32
    %c0_i32_1 = arith.constant 0 : i32
    return %c0_i32, %c0_i32_0 : i32, i32
  }
  func.func @transform_5(%arg0: i32) -> (i32, i32) {
    %c0_i32 = arith.constant 0 : i32
    %c0_i32_0 = arith.constant 0 : i32
    %c0_i32_1 = arith.constant 0 : i32
    return %c0_i32, %c0_i32_0 : i32, i32
  }
  func.func @transform_6(%arg0: i32) -> (i32, i32) {
    %c0_i32 = arith.constant 0 : i32
    %c0_i32_0 = arith.constant 0 : i32
    return %arg0, %c0_i32 : i32, i32
  }
}

</mosaic_0001>

<bundles_post_ra>
// kernel: stock_predictor_forward.1
= control target key start
LH: loop header
LB: loop body
LE: loop exit
PB: predicated region body
PF: predicated region fallthrough
CT: control target
= control target key end

     0   :  { %v1753_v1 = vmov 0   ;;  %v76_v37 = vlaneseq  ;;  %vm1755_vm0 = vmmov 0   ;;  %vm1425_vm1 = vcmask 7168   ;;  %s2540_s3 = inlined_call_operand.vmem [shape: bf16[128,512], index: 3, kind: input, shape index: {}]   ;;  %s2541_s0 = inlined_call_operand.vmem [shape: f32[8,8,1], index: 0, kind: input, shape index: {}]   ;;  %s2542_s1 = inlined_call_operand.vmem [shape: f32[1,512], index: 1, kind: input, shape index: {}]   ;;  %s2543_s2 = inlined_call_operand.vmem [shape: f32[1,512], index: 2, kind: input, shape index: {}]   ;;  %s2544_s4 = inlined_call_operand.vmem [shape: f32[128,1], index: 4, kind: input, shape index: {}]   ;;  %s2545_s5 = inlined_call_operand.<no memory space> [shape: f32[1,1], index: 5, kind: input, shape index: {}]   ;;  %s2546_s6 = inlined_call_operand.vmem [shape: f32[8,1], index: 6, kind: output, shape index: {}]  }
   0x1   :  { %v1794_v0 = vld [vmem:[%s2540_s3 + $0xe4] ss:$16 sps:$4 sm:$0xff]   ;;  %442 = vmatprep.mubr.bf16.mxu0 %v1753_v1  ;;  %483 = vmatprep.mubr.bf16.mxu1 %v1753_v1  ;;  %v1801_v2 = vld [vmem:[%s2540_s3 + $0xec] ss:$16 sps:$4 sm:$0xff]   ;;  %v1809_v3 = vld [vmem:[%s2540_s3 + $0xe0] ss:$16 sps:$4 sm:$0xff]  }
   0x2   :  { %1543 = vset.pattern.permute.xlu0 %v1753_v1  ;;  %1544 = vset.pattern.permute.xlu1 %v1753_v1  ;;  %v1814_v4 = vld [vmem:[%s2540_s3 + $0xe8] ss:$16 sps:$4 sm:$0xff]   ;;  %v1820_v5 = vld [vmem:[%s2540_s3 + $0xc4] ss:$16 sps:$4 sm:$0xff]   ;;  %v1827_v6 = vld [vmem:[%s2540_s3 + $0xcc] ss:$16 sps:$4 sm:$0xff]  }
   0x3   :  { %410 = vmatprep.subr.bf16.mxu0 %v1794_v0  ;;  %451 = vmatprep.subr.bf16.mxu1 %v1801_v2  ;;  %v1832_v7 = vld [vmem:[%s2540_s3 + $0xc0] ss:$16 sps:$4 sm:$0xff]   ;;  %v1838_v8 = vld [vmem:[%s2540_s3 + $0xc8] ss:$16 sps:$4 sm:$0xff]   ;;  %v1844_v9 = vld [vmem:[%s2540_s3 + $0xa4] ss:$16 sps:$4 sm:$0xff]  }
   0x4   :  { %411 = vmatpush1.bf16.msra.mxu0 %v1809_v3  ;;  %452 = vmatpush1.bf16.msra.mxu1 %v1814_v4  ;;  %v1849_v10 = vld [vmem:[%s2540_s3 + $0xac] ss:$16 sps:$4 sm:$0xff]   ;;  %v1854_v11 = vld [vmem:[%s2540_s3 + $0xa0] ss:$16 sps:$4 sm:$0xff]   ;;  %v1859_v12 = vld [vmem:[%s2540_s3 + $0xa8] ss:$16 sps:$4 sm:$0xff]  }
   0x5   :  { %412 = vmatprep.subr.bf16.mxu0 %v1820_v5  ;;  %453 = vmatprep.subr.bf16.mxu1 %v1827_v6  ;;  %v1866_v13 = vld [vmem:[%s2540_s3 + $0x84] ss:$16 sps:$4 sm:$0xff]   ;;  %v1873_v14 = vld [vmem:[%s2540_s3 + $0x8c] ss:$16 sps:$4 sm:$0xff]   ;;  %v1878_v15 = vld [vmem:[%s2540_s3 + $0x80] ss:$16 sps:$4 sm:$0xff]  }
   0x6   :  { %v1885_v16 = vld [vmem:[%s2540_s3 + $0x88] ss:$16 sps:$4 sm:$0xff]   ;;  %v1890_v17 = vld [vmem:[%s2540_s3 + $0x64] ss:$16 sps:$4 sm:$0xff]   ;;  %v1897_v18 = vld [vmem:[%s2540_s3 + $0x6c] ss:$16 sps:$4 sm:$0xff]  }
   0x7   :  { %v1902_v19 = vld [vmem:[%s2540_s3 + $0x60] ss:$16 sps:$4 sm:$0xff]   ;;  %v1907_v20 = vld [vmem:[%s2540_s3 + $0x68] ss:$16 sps:$4 sm:$0xff]   ;;  %v1914_v21 = vld [vmem:[%s2540_s3 + $0x44] ss:$16 sps:$4 sm:$0xff]  }
   0x8   :  { %413 = vmatpush1.bf16.msra.mxu0 %v1832_v7  ;;  %454 = vmatpush1.bf16.msra.mxu1 %v1838_v8  ;;  %v1921_v22 = vld [vmem:[%s2540_s3 + $0x4c] ss:$16 sps:$4 sm:$0xff]   ;;  %v1928_v23 = vld [vmem:[%s2540_s3 + $0x40] ss:$16 sps:$4 sm:$0xff]   ;;  %v1933_v24 = vld [vmem:[%s2540_s3 + $0x48] ss:$16 sps:$4 sm:$0xff]  }
   0x9   :  { %414 = vmatprep.subr.bf16.mxu0 %v1844_v9  ;;  %455 = vmatprep.subr.bf16.mxu1 %v1849_v10  ;;  %v1940_v25 = vld [vmem:[%s2540_s3 + $0x24] ss:$16 sps:$4 sm:$0xff]   ;;  %v1945_v26 = vld [vmem:[%s2540_s3 + $0x2c] ss:$16 sps:$4 sm:$0xff]   ;;  %v1958_v29 = vld [vmem:[%s2540_s3 + $0x20] ss:$16 sps:$4 sm:$0xff]  }
   0xa   :  { %v26_v27 = vld [vmem:[%s2541_s0] sm:$0xff]  ;;  %v27_v28 = vld [vmem:[%s2541_s0 + $0x8] sm:$0xff]  ;;  %v32_v36 = vld [vmem:[%s2541_s0 + $0x30] sm:$0xff]  ;;  %v77_v38 = vshrl.u32 %v76_v37, 7 }
   0xb   :  { %37 = vperm.xlu0 %1543, %v26_v27   ;;  %v1963_v30 = vld [vmem:[%s2540_s3 + $0x28] ss:$16 sps:$4 sm:$0xff]   ;;  %v1970_v31 = vld [vmem:[%s2540_s3 + $0x4] ss:$16 sps:$4 sm:$0xff]   ;;  %v1975_v32 = vld [vmem:[%s2540_s3 + $0xc] ss:$16 sps:$4 sm:$0xff]  }
   0xc   :  { %415 = vmatpush1.bf16.msra.mxu0 %v1854_v11  ;;  %456 = vmatpush1.bf16.msra.mxu1 %v1859_v12  ;;  %v30_v33 = vld [vmem:[%s2541_s0 + $0x20] sm:$0xff]  ;;  %v1990_v35 = vld [vmem:[%s2540_s3 + $0x8] ss:$16 sps:$4 sm:$0xff]   ;;  %v78_v39 = vsub.s32 0, %v77_v38  ;;  %v82_v41 = vsub.s32 1, %v77_v38  ;;  %v90_v50 = vsub.s32 3, %v77_v38 }
   0xd   :  { %416 = vmatprep.subr.bf16.mxu0 %v1866_v13  ;;  %457 = vmatprep.subr.bf16.mxu1 %v1873_v14  ;;  %v1985_v34 = vld [vmem:[%s2540_s3] ss:$16 sps:$4 sm:$0xff]   ;;  %v86_v57 = vsub.s32 2, %v77_v38 }
   0xe   :  { %v34_v40 = vld [vmem:[%s2542_s1] sm:$0xf] }
   0xf   :  { %42 = vperm.xlu0 %1543, %v27_v28   ;;  %v2040_v42 = vrot.slane %v34_v40, %v78_v39  ;;  %v128_v43 = vld [vmem:[%s2543_s2] sm:$0xf]  ;;  %v2045_v44 = vrot.slane %v34_v40, %v82_v41  ;;  %v2055_v53 = vrot.slane %v34_v40, %v90_v50 }
  0x10   :  { %417 = vmatpush1.bf16.msra.mxu0 %v1878_v15  ;;  %458 = vmatpush1.bf16.msra.mxu1 %v1885_v16  ;;  %v2048_v47 = vrot.slane %v128_v43, %v78_v39  ;;  %v2051_v49 = vrot.slane %v128_v43, %v82_v41  ;;  %v2058_v63 = vrot.slane %v128_v43, %v90_v50 }
  0x11   :  { %418 = vmatprep.subr.bf16.mxu0 %v1890_v17  ;;  %459 = vmatprep.subr.bf16.mxu1 %v1897_v18 }
  0x13   :  { %57 = vperm.xlu0 %1543, %v30_v33  }
  0x14   :  { %419 = vmatpush1.bf16.msra.mxu0 %v1902_v19  ;;  %460 = vmatpush1.bf16.msra.mxu1 %v1907_v20 }
  0x15   :  { %420 = vmatprep.subr.bf16.mxu0 %v1914_v21  ;;  %461 = vmatprep.subr.bf16.mxu1 %v1921_v22 }
  0x17   :  { %67 = vperm.xlu0 %1543, %v32_v36   ;;  %v2060_v36 = vrot.slane %v34_v40, %v86_v57 }
  0x18   :  { %421 = vmatpush1.bf16.msra.mxu0 %v1928_v23  ;;  %462 = vmatpush1.bf16.msra.mxu1 %v1933_v24 }
  0x19   :  { %422 = vmatprep.subr.bf16.mxu0 %v1940_v25  ;;  %463 = vmatprep.subr.bf16.mxu1 %v1945_v26 }
  0x1c   :  { %423 = vmatpush1.bf16.msra.mxu0 %v1958_v29  ;;  %464 = vmatpush1.bf16.msra.mxu1 %v1963_v30 }
  0x1d   :  { %424 = vmatprep.subr.bf16.mxu0 %v1970_v31  ;;  %465 = vmatprep.subr.bf16.mxu1 %v1975_v32 }
  0x20   :  { %425 = vmatpush1.bf16.msra.mxu0 %v1985_v34  ;;  %466 = vmatpush1.bf16.msra.mxu1 %v1990_v35 }
  0x21   :  { %526 = vmatprep.subr.bf16.mxu0 %v1794_v0  ;;  %567 = vmatprep.subr.bf16.mxu1 %v1801_v2 }
  0x23   :  { %443 = vmatmul.mubr.bf16.vlgmr.msra.gmra.mxu0 %v1753_v1  ;;  %484 = vmatmul.mubr.bf16.vlgmr.msra.gmra.mxu1 %v1753_v1 }
  0x24   :  { %527 = vmatpush1.bf16.msra.mxu0 %v1809_v3  ;;  %568 = vmatpush1.bf16.msra.mxu1 %v1814_v4 }
  0x25   :  { %528 = vmatprep.subr.bf16.mxu0 %v1820_v5  ;;  %569 = vmatprep.subr.bf16.mxu1 %v1827_v6 }
  0x26   :  { %558 = vmatprep.mubr.bf16.mxu0 %v1753_v1  ;;  %599 = vmatprep.mubr.bf16.mxu1 %v1753_v1 }
  0x28   :  { %529 = vmatpush1.bf16.msra.mxu0 %v1832_v7  ;;  %570 = vmatpush1.bf16.msra.mxu1 %v1838_v8 }
  0x29   :  { %530 = vmatprep.subr.bf16.mxu0 %v1844_v9  ;;  %571 = vmatprep.subr.bf16.mxu1 %v1849_v10 }
  0x2c   :  { %531 = vmatpush1.bf16.msra.mxu0 %v1854_v11  ;;  %572 = vmatpush1.bf16.msra.mxu1 %v1859_v12 }
  0x2d   :  { %532 = vmatprep.subr.bf16.mxu0 %v1866_v13  ;;  %573 = vmatprep.subr.bf16.mxu1 %v1873_v14 }
  0x30   :  { %533 = vmatpush1.bf16.msra.mxu0 %v1878_v15  ;;  %574 = vmatpush1.bf16.msra.mxu1 %v1885_v16 }
  0x31   :  { %534 = vmatprep.subr.bf16.mxu0 %v1890_v17  ;;  %575 = vmatprep.subr.bf16.mxu1 %v1897_v18 }
  0x34   :  { %535 = vmatpush1.bf16.msra.mxu0 %v1902_v19  ;;  %576 = vmatpush1.bf16.msra.mxu1 %v1907_v20 }
  0x35   :  { %536 = vmatprep.subr.bf16.mxu0 %v1914_v21  ;;  %577 = vmatprep.subr.bf16.mxu1 %v1921_v22 }
  0x38   :  { %537 = vmatpush1.bf16.msra.mxu0 %v1928_v23  ;;  %578 = vmatpush1.bf16.msra.mxu1 %v1933_v24 }
  0x39   :  { %538 = vmatprep.subr.bf16.mxu0 %v1940_v25  ;;  %579 = vmatprep.subr.bf16.mxu1 %v1945_v26 }
  0x3c   :  { %539 = vmatpush1.bf16.msra.mxu0 %v1958_v29  ;;  %580 = vmatpush1.bf16.msra.mxu1 %v1963_v30 }
  0x3d   :  { %540 = vmatprep.subr.bf16.mxu0 %v1970_v31  ;;  %581 = vmatprep.subr.bf16.mxu1 %v1975_v32 }
  0x40   :  { %541 = vmatpush1.bf16.msra.mxu0 %v1985_v34  ;;  %582 = vmatpush1.bf16.msra.mxu1 %v1990_v35 }
  0x41   :  { %642 = vmatprep.subr.bf16.mxu0 %v1794_v0  ;;  %683 = vmatprep.subr.bf16.mxu1 %v1801_v2 }
  0x86   :  { %v38_v45 = vpop.permute.xlu0 %37 }
  0x87   :  { %v96_v46 = vmul.f32 %v2040_v42, %v38_v45  ;;  %v97_v48 = vmul.f32 %v2045_v44, %v38_v45  ;;  %v99_v62 = vmul.f32 %v2055_v53, %v38_v45  ;;  %v98_v38 = vmul.f32 %v2060_v36, %v38_v45 }
  0x89   :  { %v150_v51 = vadd.f32 %v2048_v47, %v96_v46  ;;  %v151_v52 = vadd.f32 %v2051_v49, %v97_v48  ;;  %v153_v41 = vadd.f32 %v2058_v63, %v99_v62  ;;  %v2064_v46 = vrot.slane %v128_v43, %v86_v57 }
  0xe3   :  { %v444_v54 = vpop.f32.mrf.mxu0  ;;  %v485_v55 = vpop.f32.mrf.mxu1 }
  0xe4   :  { %v492_v56 = vadd.f32 %v444_v54, %v150_v51  ;;  %v152_v51 = vadd.f32 %v2064_v46, %v98_v38  ;;  %v31_v38 = vld [vmem:[%s2541_s0 + $0x28] sm:$0xff] }
  0xe5   :  { %v446_v58 = vpop.f32.mrf.mxu0  ;;  %v487_v59 = vpop.f32.mrf.mxu1 }
  0xe6   :  { %v1463_v60 = vmul.f32 -1.442695, %v492_v56  ;;  %v493_v61 = vadd.f32 %v446_v58, %v151_v52  ;;  %v495_v48 = vadd.f32 %v487_v59, %v153_v41  ;;  %v494_v54 = vadd.f32 %v485_v55, %v152_v51  ;;  %v29_v41 = vld [vmem:[%s2541_s0 + $0x18] sm:$0xff]  ;;  %v43_v51 = vpop.permute.xlu0 %42 }
  0xe7   :  { %v448_v27 = vpop.f32.mrf.mxu0  ;;  %v489_v28 = vpop.f32.mrf.mxu1 }
  0xe8   :  { %1593 = vpow2.f32 %v1463_v60  ;;  %v1464_v33 = vmul.f32 -1.442695, %v493_v61  ;;  %v1465_v50 = vmul.f32 -1.442695, %v495_v48  ;;  %v33_v48 = vld [vmem:[%s2541_s0 + $0x38] sm:$0xff] }
  0xe9   :  { %v449_v37 = vpop.f32.mrf.mxu0  ;;  %v490_v39 = vpop.f32.mrf.mxu1 }
  0xea   :  { %1595 = vpow2.f32 %v1464_v33  ;;  %v28_v39 = vld [vmem:[%s2541_s0 + $0x10] sm:$0xff] }
  0xeb   :  { %1597 = vpow2.f32 %v1465_v50  ;;  %47 = vperm.xlu1 %1544, %v28_v39   ;;  %v100_v50 = vmul.f32 %v2040_v42, %v43_v51 }
  0xef   :  { %52 = vperm.xlu1 %1544, %v29_v41   ;;  %v102_v41 = vmul.f32 %v2060_v36, %v43_v51 }
  0xf3   :  { %62 = vperm.xlu1 %1544, %v31_v38  }
  0xf5   :  { %v1594_v52 = vpop.eup %1593 }
  0xf6   :  { %v499_v56 = vadd.f32 1.0, %v1594_v52  ;;  %v101_v52 = vmul.f32 %v2045_v44, %v43_v51 }
  0xf7   :  { %v1596_v58 = vpop.eup %1595  ;;  %72 = vperm.xlu1 %1544, %v33_v48   ;;  %v156_v48 = vadd.f32 %v2064_v46, %v102_v41 }
  0xf8   :  { %1599 = vrcp.f32 %v499_v56  ;;  %v505_v40 = vadd.f32 1.0, %v1596_v58  ;;  %v1598_v60 = vpop.eup %1597 }
  0xf9   :  { %1601 = vtanh.f32 %v494_v54  ;;  %v512_v45 = vadd.f32 1.0, %v1598_v60  ;;  %v154_v54 = vadd.f32 %v2048_v47, %v100_v50  ;;  %v155_v60 = vadd.f32 %v2051_v49, %v101_v52 }
  0xfa   :  { %1603 = vrcp.f32 %v505_v40 }
  0xfb   :  { %1605 = vrcp.f32 %v512_v45 }
 0x105   :  { %v1600_v61 = vpop.eup %1599 }
 0x106   :  { %v1602_v62 = vpop.eup %1601 }
 0x107   :  { %v1604_v27 = vpop.eup %1603  ;;  %v516_v57 = vmul.f32 %v1602_v62, %v1600_v61 }
 0x108   :  { %v515_v43 = vmul.f32 0.0, %v1604_v27  ;;  %v1606_v55 = vpop.eup %1605 }
 0x10a   :  { %v2067_v59 = vadd.f32 %v516_v57, %v515_v43 }
 0x10c   :  { %1607 = vtanh.f32 %v2067_v59 }
 0x119   :  { %v1608_v28 = vpop.eup %1607 }
 0x11a   :  { %v519_v33 = vmul.f32 %v1608_v28, %v1606_v55  ;;  %v103_v28 = vmul.f32 %v2055_v53, %v43_v51 }
 0x11c   :  { %v525_v37 = vpack.c.bf16 %v519_v33, %v519_v33  ;;  %v157_v39 = vadd.f32 %v2058_v63, %v103_v28 }
 0x11e   :  { %559 = vmatmul.mubr.bf16.vlgmr.msra.gmra.mxu0 %v525_v37  ;;  %600 = vmatmul.mubr.bf16.vlgmr.msra.gmra.mxu1 %v525_v37 }
 0x11f   :  { %643 = vmatpush1.bf16.msra.mxu0 %v1809_v3  ;;  %684 = vmatpush1.bf16.msra.mxu1 %v1814_v4 }
 0x120   :  { %644 = vmatprep.subr.bf16.mxu0 %v1820_v5  ;;  %685 = vmatprep.subr.bf16.mxu1 %v1827_v6 }
 0x121   :  { %674 = vmatprep.mubr.bf16.mxu0 %v1753_v1  ;;  %715 = vmatprep.mubr.bf16.mxu1 %v1753_v1 }
 0x123   :  { %645 = vmatpush1.bf16.msra.mxu0 %v1832_v7  ;;  %686 = vmatpush1.bf16.msra.mxu1 %v1838_v8 }
 0x124   :  { %646 = vmatprep.subr.bf16.mxu0 %v1844_v9  ;;  %687 = vmatprep.subr.bf16.mxu1 %v1849_v10 }
 0x127   :  { %647 = vmatpush1.bf16.msra.mxu0 %v1854_v11  ;;  %688 = vmatpush1.bf16.msra.mxu1 %v1859_v12 }
 0x128   :  { %648 = vmatprep.subr.bf16.mxu0 %v1866_v13  ;;  %689 = vmatprep.subr.bf16.mxu1 %v1873_v14 }
 0x12b   :  { %649 = vmatpush1.bf16.msra.mxu0 %v1878_v15  ;;  %690 = vmatpush1.bf16.msra.mxu1 %v1885_v16 }
 0x12c   :  { %650 = vmatprep.subr.bf16.mxu0 %v1890_v17  ;;  %691 = vmatprep.subr.bf16.mxu1 %v1897_v18 }
 0x12f   :  { %651 = vmatpush1.bf16.msra.mxu0 %v1902_v19  ;;  %692 = vmatpush1.bf16.msra.mxu1 %v1907_v20 }
 0x130   :  { %652 = vmatprep.subr.bf16.mxu0 %v1914_v21  ;;  %693 = vmatprep.subr.bf16.mxu1 %v1921_v22 }
 0x133   :  { %653 = vmatpush1.bf16.msra.mxu0 %v1928_v23  ;;  %694 = vmatpush1.bf16.msra.mxu1 %v1933_v24 }
 0x134   :  { %654 = vmatprep.subr.bf16.mxu0 %v1940_v25  ;;  %695 = vmatprep.subr.bf16.mxu1 %v1945_v26 }
 0x137   :  { %655 = vmatpush1.bf16.msra.mxu0 %v1958_v29  ;;  %696 = vmatpush1.bf16.msra.mxu1 %v1963_v30 }
 0x138   :  { %656 = vmatprep.subr.bf16.mxu0 %v1970_v31  ;;  %697 = vmatprep.subr.bf16.mxu1 %v1975_v32 }
 0x13b   :  { %657 = vmatpush1.bf16.msra.mxu0 %v1985_v34  ;;  %698 = vmatpush1.bf16.msra.mxu1 %v1990_v35 }
 0x13c   :  { %758 = vmatprep.subr.bf16.mxu0 %v1794_v0  ;;  %799 = vmatprep.subr.bf16.mxu1 %v1801_v2 }
 0x1de   :  { %v560_v56 = vpop.f32.mrf.mxu0  ;;  %v601_v58 = vpop.f32.mrf.mxu1 }
 0x1df   :  { %v608_v40 = vadd.f32 %v560_v56, %v154_v54  ;;  %v610_v54 = vadd.f32 %v601_v58, %v156_v48 }
 0x1e0   :  { %v562_v61 = vpop.f32.mrf.mxu0  ;;  %v603_v62 = vpop.f32.mrf.mxu1 }
 0x1e1   :  { %v1466_v27 = vmul.f32 -1.442695, %v608_v40  ;;  %v609_v45 = vadd.f32 %v562_v61, %v155_v60  ;;  %v611_v38 = vadd.f32 %v603_v62, %v157_v39 }
 0x1e2   :  { %v564_v43 = vpop.f32.mrf.mxu0  ;;  %v605_v57 = vpop.f32.mrf.mxu1 }
 0x1e3   :  { %1609 = vpow2.f32 %v1466_v27  ;;  %v1467_v55 = vmul.f32 -1.442695, %v609_v45  ;;  %v1468_v50 = vmul.f32 -1.442695, %v611_v38 }
 0x1e4   :  { %v565_v33 = vpop.f32.mrf.mxu0  ;;  %v606_v37 = vpop.f32.mrf.mxu1 }
 0x1e5   :  { %1611 = vpow2.f32 %v1467_v55 }
 0x1e6   :  { %1613 = vpow2.f32 %v1468_v50 }
 0x1f0   :  { %v1610_v52 = vpop.eup %1609 }
 0x1f1   :  { %v615_v56 = vadd.f32 1.0, %v1610_v52 }
 0x1f2   :  { %v1612_v40 = vpop.eup %1611 }
 0x1f3   :  { %1615 = vrcp.f32 %v615_v56  ;;  %v621_v60 = vadd.f32 1.0, %v1612_v40  ;;  %v1614_v61 = vpop.eup %1613 }
 0x1f4   :  { %1617 = vtanh.f32 %v610_v54  ;;  %v628_v57 = vadd.f32 1.0, %v1614_v61 }
 0x1f5   :  { %1619 = vrcp.f32 %v621_v60 }
 0x1f6   :  { %1621 = vrcp.f32 %v628_v57 }
 0x200   :  { %v1616_v27 = vpop.eup %1615 }
 0x201   :  { %v1618_v45 = vpop.eup %1617 }
 0x202   :  { %v1620_v43 = vpop.eup %1619  ;;  %v632_v55 = vmul.f32 %v1618_v45, %v1616_v27 }
 0x203   :  { %v631_v51 = vmul.f32 %v1620_v43, %v2067_v59  ;;  %v1622_v58 = vpop.eup %1621  ;;  %v48_v59 = vpop.permute.xlu1 %47 }
 0x204   :  { %v104_v39 = vmul.f32 %v2040_v42, %v48_v59  ;;  %v105_v41 = vmul.f32 %v2045_v44, %v48_v59  ;;  %v107_v27 = vmul.f32 %v2055_v53, %v48_v59 }
 0x205   :  { %v2125_v62 = vadd.f32 %v632_v55, %v631_v51 }
 0x206   :  { %v158_v38 = vadd.f32 %v2048_v47, %v104_v39  ;;  %v159_v48 = vadd.f32 %v2051_v49, %v105_v41 }
 0x207   :  { %1623 = vtanh.f32 %v2125_v62 }
 0x214   :  { %v1624_v28 = vpop.eup %1623 }
 0x215   :  { %v635_v33 = vmul.f32 %v1624_v28, %v1622_v58  ;;  %v161_v58 = vadd.f32 %v2058_v63, %v107_v27  ;;  %v106_v28 = vmul.f32 %v2060_v36, %v48_v59 }
 0x217   :  { %v641_v37 = vpack.c.bf16 %v635_v33, %v635_v33 }
 0x219   :  { %675 = vmatmul.mubr.bf16.vlgmr.msra.gmra.mxu0 %v641_v37  ;;  %716 = vmatmul.mubr.bf16.vlgmr.msra.gmra.mxu1 %v641_v37  ;;  %v160_v37 = vadd.f32 %v2064_v46, %v106_v28 }
 0x21a   :  { %759 = vmatpush1.bf16.msra.mxu0 %v1809_v3  ;;  %800 = vmatpush1.bf16.msra.mxu1 %v1814_v4 }
 0x21b   :  { %760 = vmatprep.subr.bf16.mxu0 %v1820_v5  ;;  %801 = vmatprep.subr.bf16.mxu1 %v1827_v6 }
 0x21c   :  { %790 = vmatprep.mubr.bf16.mxu0 %v1753_v1  ;;  %831 = vmatprep.mubr.bf16.mxu1 %v1753_v1 }
 0x21e   :  { %761 = vmatpush1.bf16.msra.mxu0 %v1832_v7  ;;  %802 = vmatpush1.bf16.msra.mxu1 %v1838_v8 }
 0x21f   :  { %762 = vmatprep.subr.bf16.mxu0 %v1844_v9  ;;  %803 = vmatprep.subr.bf16.mxu1 %v1849_v10 }
 0x222   :  { %763 = vmatpush1.bf16.msra.mxu0 %v1854_v11  ;;  %804 = vmatpush1.bf16.msra.mxu1 %v1859_v12 }
 0x223   :  { %764 = vmatprep.subr.bf16.mxu0 %v1866_v13  ;;  %805 = vmatprep.subr.bf16.mxu1 %v1873_v14 }
 0x226   :  { %765 = vmatpush1.bf16.msra.mxu0 %v1878_v15  ;;  %806 = vmatpush1.bf16.msra.mxu1 %v1885_v16 }
 0x227   :  { %766 = vmatprep.subr.bf16.mxu0 %v1890_v17  ;;  %807 = vmatprep.subr.bf16.mxu1 %v1897_v18 }
 0x22a   :  { %767 = vmatpush1.bf16.msra.mxu0 %v1902_v19  ;;  %808 = vmatpush1.bf16.msra.mxu1 %v1907_v20 }
 0x22b   :  { %768 = vmatprep.subr.bf16.mxu0 %v1914_v21  ;;  %809 = vmatprep.subr.bf16.mxu1 %v1921_v22 }
 0x22e   :  { %769 = vmatpush1.bf16.msra.mxu0 %v1928_v23  ;;  %810 = vmatpush1.bf16.msra.mxu1 %v1933_v24 }
 0x22f   :  { %770 = vmatprep.subr.bf16.mxu0 %v1940_v25  ;;  %811 = vmatprep.subr.bf16.mxu1 %v1945_v26 }
 0x232   :  { %771 = vmatpush1.bf16.msra.mxu0 %v1958_v29  ;;  %812 = vmatpush1.bf16.msra.mxu1 %v1963_v30 }
 0x233   :  { %772 = vmatprep.subr.bf16.mxu0 %v1970_v31  ;;  %813 = vmatprep.subr.bf16.mxu1 %v1975_v32 }
 0x236   :  { %773 = vmatpush1.bf16.msra.mxu0 %v1985_v34  ;;  %814 = vmatpush1.bf16.msra.mxu1 %v1990_v35 }
 0x237   :  { %874 = vmatprep.subr.bf16.mxu0 %v1794_v0  ;;  %915 = vmatprep.subr.bf16.mxu1 %v1801_v2 }
 0x2d9   :  { %v676_v50 = vpop.f32.mrf.mxu0  ;;  %v717_v52 = vpop.f32.mrf.mxu1 }
 0x2da   :  { %v724_v54 = vadd.f32 %v676_v50, %v158_v38  ;;  %v726_v38 = vadd.f32 %v717_v52, %v160_v37 }
 0x2db   :  { %v678_v56 = vpop.f32.mrf.mxu0  ;;  %v719_v40 = vpop.f32.mrf.mxu1 }
 0x2dc   :  { %v1469_v60 = vmul.f32 -1.442695, %v724_v54  ;;  %v725_v61 = vadd.f32 %v678_v56, %v159_v48  ;;  %v727_v33 = vadd.f32 %v719_v40, %v161_v58 }
 0x2dd   :  { %v680_v45 = vpop.f32.mrf.mxu0  ;;  %v721_v43 = vpop.f32.mrf.mxu1 }
 0x2de   :  { %1625 = vpow2.f32 %v1469_v60  ;;  %v1470_v57 = vmul.f32 -1.442695, %v725_v61  ;;  %v1471_v39 = vmul.f32 -1.442695, %v727_v33 }
 0x2df   :  { %v681_v55 = vpop.f32.mrf.mxu0  ;;  %v722_v51 = vpop.f32.mrf.mxu1 }
 0x2e0   :  { %1627 = vpow2.f32 %v1470_v57 }
 0x2e1   :  { %1629 = vpow2.f32 %v1471_v39 }
 0x2eb   :  { %v1626_v41 = vpop.eup %1625 }
 0x2ec   :  { %v731_v48 = vadd.f32 1.0, %v1626_v41 }
 0x2ed   :  { %v1628_v50 = vpop.eup %1627 }
 0x2ee   :  { %1631 = vrcp.f32 %v731_v48  ;;  %v737_v54 = vadd.f32 1.0, %v1628_v50  ;;  %v1630_v56 = vpop.eup %1629 }
 0x2ef   :  { %1633 = vtanh.f32 %v726_v38  ;;  %v744_v27 = vadd.f32 1.0, %v1630_v56 }
 0x2f0   :  { %1635 = vrcp.f32 %v737_v54 }
 0x2f1   :  { %1637 = vrcp.f32 %v744_v27 }
 0x2fb   :  { %v1632_v60 = vpop.eup %1631 }
 0x2fc   :  { %v1634_v61 = vpop.eup %1633 }
 0x2fd   :  { %v1636_v45 = vpop.eup %1635  ;;  %v748_v43 = vmul.f32 %v1634_v61, %v1632_v60 }
 0x2fe   :  { %v747_v59 = vmul.f32 %v1636_v45, %v2125_v62  ;;  %v1638_v52 = vpop.eup %1637  ;;  %v53_v62 = vpop.permute.xlu1 %52 }
 0x2ff   :  { %v108_v58 = vmul.f32 %v2040_v42, %v53_v62  ;;  %v109_v28 = vmul.f32 %v2045_v44, %v53_v62  ;;  %v111_v27 = vmul.f32 %v2055_v53, %v53_v62 }
 0x300   :  { %v2171_v40 = vadd.f32 %v748_v43, %v747_v59 }
 0x301   :  { %v162_v33 = vadd.f32 %v2048_v47, %v108_v58  ;;  %v163_v38 = vadd.f32 %v2051_v49, %v109_v28 }
 0x302   :  { %1639 = vtanh.f32 %v2171_v40 }
 0x30f   :  { %v1640_v57 = vpop.eup %1639 }
 0x310   :  { %v751_v55 = vmul.f32 %v1640_v57, %v1638_v52  ;;  %v165_v52 = vadd.f32 %v2058_v63, %v111_v27  ;;  %v110_v57 = vmul.f32 %v2060_v36, %v53_v62 }
 0x312   :  { %v757_v51 = vpack.c.bf16 %v751_v55, %v751_v55 }
 0x314   :  { %791 = vmatmul.mubr.bf16.vlgmr.msra.gmra.mxu0 %v757_v51  ;;  %832 = vmatmul.mubr.bf16.vlgmr.msra.gmra.mxu1 %v757_v51  ;;  %v164_v51 = vadd.f32 %v2064_v46, %v110_v57 }
 0x315   :  { %875 = vmatpush1.bf16.msra.mxu0 %v1809_v3  ;;  %916 = vmatpush1.bf16.msra.mxu1 %v1814_v4 }
 0x316   :  { %876 = vmatprep.subr.bf16.mxu0 %v1820_v5  ;;  %917 = vmatprep.subr.bf16.mxu1 %v1827_v6 }
 0x317   :  { %906 = vmatprep.mubr.bf16.mxu0 %v1753_v1  ;;  %947 = vmatprep.mubr.bf16.mxu1 %v1753_v1 }
 0x319   :  { %877 = vmatpush1.bf16.msra.mxu0 %v1832_v7  ;;  %918 = vmatpush1.bf16.msra.mxu1 %v1838_v8 }
 0x31a   :  { %878 = vmatprep.subr.bf16.mxu0 %v1844_v9  ;;  %919 = vmatprep.subr.bf16.mxu1 %v1849_v10 }
 0x31d   :  { %879 = vmatpush1.bf16.msra.mxu0 %v1854_v11  ;;  %920 = vmatpush1.bf16.msra.mxu1 %v1859_v12 }
 0x31e   :  { %880 = vmatprep.subr.bf16.mxu0 %v1866_v13  ;;  %921 = vmatprep.subr.bf16.mxu1 %v1873_v14 }
 0x321   :  { %881 = vmatpush1.bf16.msra.mxu0 %v1878_v15  ;;  %922 = vmatpush1.bf16.msra.mxu1 %v1885_v16 }
 0x322   :  { %882 = vmatprep.subr.bf16.mxu0 %v1890_v17  ;;  %923 = vmatprep.subr.bf16.mxu1 %v1897_v18 }
 0x325   :  { %883 = vmatpush1.bf16.msra.mxu0 %v1902_v19  ;;  %924 = vmatpush1.bf16.msra.mxu1 %v1907_v20 }
 0x326   :  { %884 = vmatprep.subr.bf16.mxu0 %v1914_v21  ;;  %925 = vmatprep.subr.bf16.mxu1 %v1921_v22 }
 0x329   :  { %885 = vmatpush1.bf16.msra.mxu0 %v1928_v23  ;;  %926 = vmatpush1.bf16.msra.mxu1 %v1933_v24 }
 0x32a   :  { %886 = vmatprep.subr.bf16.mxu0 %v1940_v25  ;;  %927 = vmatprep.subr.bf16.mxu1 %v1945_v26 }
 0x32d   :  { %887 = vmatpush1.bf16.msra.mxu0 %v1958_v29  ;;  %928 = vmatpush1.bf16.msra.mxu1 %v1963_v30 }
 0x32e   :  { %888 = vmatprep.subr.bf16.mxu0 %v1970_v31  ;;  %929 = vmatprep.subr.bf16.mxu1 %v1975_v32 }
 0x331   :  { %889 = vmatpush1.bf16.msra.mxu0 %v1985_v34  ;;  %930 = vmatpush1.bf16.msra.mxu1 %v1990_v35 }
 0x332   :  { %990 = vmatprep.subr.bf16.mxu0 %v1794_v0  ;;  %1031 = vmatprep.subr.bf16.mxu1 %v1801_v2 }
 0x3d4   :  { %v792_v37 = vpop.f32.mrf.mxu0  ;;  %v833_v39 = vpop.f32.mrf.mxu1 }
 0x3d5   :  { %v840_v41 = vadd.f32 %v792_v37, %v162_v33  ;;  %v842_v33 = vadd.f32 %v833_v39, %v164_v51 }
 0x3d6   :  { %v794_v48 = vpop.f32.mrf.mxu0  ;;  %v835_v50 = vpop.f32.mrf.mxu1 }
 0x3d7   :  { %v1472_v54 = vmul.f32 -1.442695, %v840_v41  ;;  %v841_v56 = vadd.f32 %v794_v48, %v163_v38  ;;  %v843_v55 = vadd.f32 %v835_v50, %v165_v52 }
 0x3d8   :  { %v796_v60 = vpop.f32.mrf.mxu0  ;;  %v837_v61 = vpop.f32.mrf.mxu1 }
 0x3d9   :  { %1641 = vpow2.f32 %v1472_v54  ;;  %v1473_v45 = vmul.f32 -1.442695, %v841_v56  ;;  %v1474_v58 = vmul.f32 -1.442695, %v843_v55 }
 0x3da   :  { %v797_v43 = vpop.f32.mrf.mxu0  ;;  %v838_v59 = vpop.f32.mrf.mxu1 }
 0x3db   :  { %1643 = vpow2.f32 %v1473_v45 }
 0x3dc   :  { %1645 = vpow2.f32 %v1474_v58 }
 0x3e6   :  { %v1642_v28 = vpop.eup %1641 }
 0x3e7   :  { %v847_v37 = vadd.f32 1.0, %v1642_v28 }
 0x3e8   :  { %v1644_v41 = vpop.eup %1643 }
 0x3e9   :  { %1647 = vrcp.f32 %v847_v37  ;;  %v853_v38 = vadd.f32 1.0, %v1644_v41  ;;  %v1646_v48 = vpop.eup %1645 }
 0x3ea   :  { %1649 = vtanh.f32 %v842_v33  ;;  %v860_v61 = vadd.f32 1.0, %v1646_v48 }
 0x3eb   :  { %1651 = vrcp.f32 %v853_v38 }
 0x3ec   :  { %1653 = vrcp.f32 %v860_v61 }
 0x3f6   :  { %v1648_v54 = vpop.eup %1647 }
 0x3f7   :  { %v1650_v56 = vpop.eup %1649 }
 0x3f8   :  { %v1652_v60 = vpop.eup %1651  ;;  %v864_v45 = vmul.f32 %v1650_v56, %v1648_v54 }
 0x3f9   :  { %v863_v62 = vmul.f32 %v1652_v60, %v2171_v40  ;;  %v1654_v39 = vpop.eup %1653 }
 0x3fb   :  { %v2217_v50 = vadd.f32 %v864_v45, %v863_v62 }
 0x3fd   :  { %1655 = vtanh.f32 %v2217_v50 }
 0x40a   :  { %v1656_v27 = vpop.eup %1655 }
 0x40b   :  { %v867_v43 = vmul.f32 %v1656_v27, %v1654_v39  ;;  %v2269_v27 = vld [vmem:[%s2540_s3 + $0xe0] ss:$16 sps:$4 sm:$0xff]  }
 0x40d   :  { %v873_v59 = vpack.c.bf16 %v867_v43, %v867_v43  ;;  %v2281_v43 = vld [vmem:[%s2540_s3 + $0xc4] ss:$16 sps:$4 sm:$0xff]  }
 0x40f   :  { %907 = vmatmul.mubr.bf16.vlgmr.msra.gmra.mxu0 %v873_v59  ;;  %948 = vmatmul.mubr.bf16.vlgmr.msra.gmra.mxu1 %v873_v59  ;;  %v2287_v59 = vld [vmem:[%s2540_s3 + $0xcc] ss:$16 sps:$4 sm:$0xff]  }
 0x410   :  { %991 = vmatpush1.bf16.msra.mxu0 %v1809_v3  ;;  %1032 = vmatpush1.bf16.msra.mxu1 %v1814_v4  ;;  %v58_v3 = vpop.permute.xlu0 %57 }
 0x411   :  { %992 = vmatprep.subr.bf16.mxu0 %v1820_v5  ;;  %1033 = vmatprep.subr.bf16.mxu1 %v1827_v6  ;;  %v112_v4 = vmul.f32 %v2040_v42, %v58_v3  ;;  %v113_v5 = vmul.f32 %v2045_v44, %v58_v3 }
 0x412   :  { %1022 = vmatprep.mubr.bf16.mxu0 %v1753_v1  ;;  %1063 = vmatprep.mubr.bf16.mxu1 %v1753_v1 }
 0x413   :  { %v166_v6 = vadd.f32 %v2048_v47, %v112_v4  ;;  %v2301_v4 = vld [vmem:[%s2540_s3 + $0xc8] ss:$16 sps:$4 sm:$0xff]  }
 0x414   :  { %993 = vmatpush1.bf16.msra.mxu0 %v1832_v7  ;;  %1034 = vmatpush1.bf16.msra.mxu1 %v1838_v8 }
 0x415   :  { %994 = vmatprep.subr.bf16.mxu0 %v1844_v9  ;;  %1035 = vmatprep.subr.bf16.mxu1 %v1849_v10  ;;  %v167_v10 = vadd.f32 %v2051_v49, %v113_v5  ;;  %v2307_v5 = vld [vmem:[%s2540_s3 + $0xa4] ss:$16 sps:$4 sm:$0xff]  }
 0x418   :  { %995 = vmatpush1.bf16.msra.mxu0 %v1854_v11  ;;  %1036 = vmatpush1.bf16.msra.mxu1 %v1859_v12 }
 0x419   :  { %996 = vmatprep.subr.bf16.mxu0 %v1866_v13  ;;  %1037 = vmatprep.subr.bf16.mxu1 %v1873_v14 }
 0x41c   :  { %997 = vmatpush1.bf16.msra.mxu0 %v1878_v15  ;;  %1038 = vmatpush1.bf16.msra.mxu1 %v1885_v16  ;;  %v115_v16 = vmul.f32 %v2055_v53, %v58_v3 }
 0x41d   :  { %998 = vmatprep.subr.bf16.mxu0 %v1890_v17  ;;  %1039 = vmatprep.subr.bf16.mxu1 %v1897_v18 }
 0x420   :  { %999 = vmatpush1.bf16.msra.mxu0 %v1902_v19  ;;  %1040 = vmatpush1.bf16.msra.mxu1 %v1907_v20  ;;  %v169_v19 = vadd.f32 %v2058_v63, %v115_v16  ;;  %v114_v20 = vmul.f32 %v2060_v36, %v58_v3  ;;  %v2295_v3 = vld [vmem:[%s2540_s3 + $0xc0] ss:$16 sps:$4 sm:$0xff]  }
 0x421   :  { %1000 = vmatprep.subr.bf16.mxu0 %v1914_v21  ;;  %1041 = vmatprep.subr.bf16.mxu1 %v1921_v22 }
 0x422   :  { %v168_v40 = vadd.f32 %v2064_v46, %v114_v20 }
 0x424   :  { %1001 = vmatpush1.bf16.msra.mxu0 %v1928_v23  ;;  %1042 = vmatpush1.bf16.msra.mxu1 %v1933_v24 }
 0x425   :  { %1002 = vmatprep.subr.bf16.mxu0 %v1940_v25  ;;  %1043 = vmatprep.subr.bf16.mxu1 %v1945_v26 }
 0x428   :  { %1003 = vmatpush1.bf16.msra.mxu0 %v1958_v29  ;;  %1044 = vmatpush1.bf16.msra.mxu1 %v1963_v30 }
 0x429   :  { %1004 = vmatprep.subr.bf16.mxu0 %v1970_v31  ;;  %1045 = vmatprep.subr.bf16.mxu1 %v1975_v32 }
 0x42c   :  { %1005 = vmatpush1.bf16.msra.mxu0 %v1985_v34  ;;  %1046 = vmatpush1.bf16.msra.mxu1 %v1990_v35 }
 0x42d   :  { %1106 = vmatprep.subr.bf16.mxu0 %v1794_v0  ;;  %1147 = vmatprep.subr.bf16.mxu1 %v1801_v2 }
 0x4cf   :  { %v908_v7 = vpop.f32.mrf.mxu0  ;;  %v949_v8 = vpop.f32.mrf.mxu1 }
 0x4d0   :  { %v956_v9 = vadd.f32 %v908_v7, %v166_v6  ;;  %v958_v55 = vadd.f32 %v949_v8, %v168_v40  ;;  %v2313_v6 = vld [vmem:[%s2540_s3 + $0xac] ss:$16 sps:$4 sm:$0xff]   ;;  %v2319_v7 = vld [vmem:[%s2540_s3 + $0xa0] ss:$16 sps:$4 sm:$0xff]   ;;  %v2325_v8 = vld [vmem:[%s2540_s3 + $0xa8] ss:$16 sps:$4 sm:$0xff]  }
 0x4d1   :  { %v910_v11 = vpop.f32.mrf.mxu0  ;;  %v951_v12 = vpop.f32.mrf.mxu1 }
 0x4d2   :  { %v1475_v13 = vmul.f32 -1.442695, %v956_v9  ;;  %v957_v14 = vadd.f32 %v910_v11, %v167_v10  ;;  %v959_v21 = vadd.f32 %v951_v12, %v169_v19  ;;  %v2331_v9 = vld [vmem:[%s2540_s3 + $0x84] ss:$16 sps:$4 sm:$0xff]   ;;  %v2337_v10 = vld [vmem:[%s2540_s3 + $0x8c] ss:$16 sps:$4 sm:$0xff]  }
 0x4d3   :  { %v912_v15 = vpop.f32.mrf.mxu0  ;;  %v953_v0 = vpop.f32.mrf.mxu1  ;;  %v2343_v11 = vld [vmem:[%s2540_s3 + $0x80] ss:$16 sps:$4 sm:$0xff]   ;;  %v2349_v12 = vld [vmem:[%s2540_s3 + $0x88] ss:$16 sps:$4 sm:$0xff]  }
 0x4d4   :  { %1657 = vpow2.f32 %v1475_v13  ;;  %v1476_v2 = vmul.f32 -1.442695, %v957_v14  ;;  %v1477_v52 = vmul.f32 -1.442695, %v959_v21  ;;  %v2355_v13 = vld [vmem:[%s2540_s3 + $0x64] ss:$16 sps:$4 sm:$0xff]  }
 0x4d5   :  { %v913_v17 = vpop.f32.mrf.mxu0  ;;  %v954_v18 = vpop.f32.mrf.mxu1  ;;  %v2361_v14 = vld [vmem:[%s2540_s3 + $0x6c] ss:$16 sps:$4 sm:$0xff]   ;;  %v2367_v15 = vld [vmem:[%s2540_s3 + $0x60] ss:$16 sps:$4 sm:$0xff]   ;;  %v2373_v0 = vld [vmem:[%s2540_s3 + $0x68] ss:$16 sps:$4 sm:$0xff]  }
 0x4d6   :  { %1659 = vpow2.f32 %v1476_v2  ;;  %v2379_v2 = vld [vmem:[%s2540_s3 + $0x44] ss:$16 sps:$4 sm:$0xff]  }
 0x4d7   :  { %1661 = vpow2.f32 %v1477_v52 }
 0x4e1   :  { %v1658_v57 = vpop.eup %1657 }
 0x4e2   :  { %v963_v51 = vadd.f32 1.0, %v1658_v57 }
 0x4e3   :  { %v1660_v58 = vpop.eup %1659 }
 0x4e4   :  { %1663 = vrcp.f32 %v963_v51  ;;  %v969_v28 = vadd.f32 1.0, %v1660_v58  ;;  %v1662_v33 = vpop.eup %1661 }
 0x4e5   :  { %1665 = vtanh.f32 %v958_v55  ;;  %v976_v48 = vadd.f32 1.0, %v1662_v33 }
 0x4e6   :  { %1667 = vrcp.f32 %v969_v28 }
 0x4e7   :  { %1669 = vrcp.f32 %v976_v48 }
 0x4f1   :  { %v1664_v37 = vpop.eup %1663 }
 0x4f2   :  { %v1666_v41 = vpop.eup %1665 }
 0x4f3   :  { %v1668_v38 = vpop.eup %1667  ;;  %v980_v54 = vmul.f32 %v1666_v41, %v1664_v37 }
 0x4f4   :  { %v979_v56 = vmul.f32 %v1668_v38, %v2217_v50  ;;  %v1670_v61 = vpop.eup %1669  ;;  %v2275_v50 = vld [vmem:[%s2540_s3 + $0xe8] ss:$16 sps:$4 sm:$0xff]  }
 0x4f6   :  { %v2263_v60 = vadd.f32 %v980_v54, %v979_v56 }
 0x4f8   :  { %1671 = vtanh.f32 %v2263_v60 }
 0x505   :  { %v1672_v45 = vpop.eup %1671 }
 0x506   :  { %v983_v62 = vmul.f32 %v1672_v45, %v1670_v61 }
 0x508   :  { %v989_v39 = vpack.c.bf16 %v983_v62, %v983_v62 }
 0x50a   :  { %1023 = vmatmul.mubr.bf16.vlgmr.msra.gmra.mxu0 %v989_v39  ;;  %1064 = vmatmul.mubr.bf16.vlgmr.msra.gmra.mxu1 %v989_v39 }
 0x50b   :  { %1107 = vmatpush1.bf16.msra.mxu0 %v2269_v27  ;;  %1148 = vmatpush1.bf16.msra.mxu1 %v2275_v50 }
 0x50c   :  { %1108 = vmatprep.subr.bf16.mxu0 %v2281_v43  ;;  %1149 = vmatprep.subr.bf16.mxu1 %v2287_v59 }
 0x50d   :  { %1138 = vmatprep.mubr.bf16.mxu0 %v1753_v1  ;;  %1179 = vmatprep.mubr.bf16.mxu1 %v1753_v1 }
 0x50f   :  { %1109 = vmatpush1.bf16.msra.mxu0 %v2295_v3  ;;  %1150 = vmatpush1.bf16.msra.mxu1 %v2301_v4 }
 0x510   :  { %1110 = vmatprep.subr.bf16.mxu0 %v2307_v5  ;;  %1151 = vmatprep.subr.bf16.mxu1 %v2313_v6 }
 0x513   :  { %1111 = vmatpush1.bf16.msra.mxu0 %v2319_v7  ;;  %1152 = vmatpush1.bf16.msra.mxu1 %v2325_v8 }
 0x514   :  { %1112 = vmatprep.subr.bf16.mxu0 %v2331_v9  ;;  %1153 = vmatprep.subr.bf16.mxu1 %v2337_v10 }
 0x517   :  { %1113 = vmatpush1.bf16.msra.mxu0 %v2343_v11  ;;  %1154 = vmatpush1.bf16.msra.mxu1 %v2349_v12 }
 0x518   :  { %1114 = vmatprep.subr.bf16.mxu0 %v2355_v13  ;;  %1155 = vmatprep.subr.bf16.mxu1 %v2361_v14 }
 0x51b   :  { %1115 = vmatpush1.bf16.msra.mxu0 %v2367_v15  ;;  %1156 = vmatpush1.bf16.msra.mxu1 %v2373_v0 }
 0x51c   :  { %1116 = vmatprep.subr.bf16.mxu0 %v2379_v2  ;;  %1157 = vmatprep.subr.bf16.mxu1 %v1921_v22  ;;  %v1740_v22 = vld [vmem:[%s2540_s3 + $0xe4] ss:$16 sps:$4 sm:$0xff]  }
 0x51f   :  { %1117 = vmatpush1.bf16.msra.mxu0 %v1928_v23  ;;  %1158 = vmatpush1.bf16.msra.mxu1 %v1933_v24  ;;  %v1741_v23 = vld [vmem:[%s2540_s3 + $0xec] ss:$16 sps:$4 sm:$0xff]   ;;  %v63_v24 = vpop.permute.xlu1 %62 }
 0x520   :  { %1118 = vmatprep.subr.bf16.mxu0 %v1940_v25  ;;  %1159 = vmatprep.subr.bf16.mxu1 %v1945_v26  ;;  %v116_v25 = vmul.f32 %v2040_v42, %v63_v24  ;;  %v117_v26 = vmul.f32 %v2045_v44, %v63_v24  ;;  %v119_v40 = vmul.f32 %v2055_v53, %v63_v24 }
 0x521   :  { %v118_v51 = vmul.f32 %v2060_v36, %v63_v24 }
 0x522   :  { %v173_v55 = vadd.f32 %v2058_v63, %v119_v40 }
 0x523   :  { %1119 = vmatpush1.bf16.msra.mxu0 %v1958_v29  ;;  %1160 = vmatpush1.bf16.msra.mxu1 %v1963_v30  ;;  %v170_v29 = vadd.f32 %v2048_v47, %v116_v25  ;;  %v172_v28 = vadd.f32 %v2064_v46, %v118_v51 }
 0x524   :  { %1120 = vmatprep.subr.bf16.mxu0 %v1970_v31  ;;  %1161 = vmatprep.subr.bf16.mxu1 %v1975_v32 }
 0x527   :  { %1121 = vmatpush1.bf16.msra.mxu0 %v1985_v34  ;;  %1162 = vmatpush1.bf16.msra.mxu1 %v1990_v35  ;;  %v171_v34 = vadd.f32 %v2051_v49, %v117_v26 }
 0x528   :  { %1222 = vmatprep.subr.bf16.mxu0 %v1740_v22  ;;  %1263 = vmatprep.subr.bf16.mxu1 %v1741_v23 }
 0x5ca   :  { %v1024_v30 = vpop.f32.mrf.mxu0  ;;  %v1065_v31 = vpop.f32.mrf.mxu1 }
 0x5cb   :  { %v1072_v32 = vadd.f32 %v1024_v30, %v170_v29  ;;  %v1074_v41 = vadd.f32 %v1065_v31, %v172_v28 }
 0x5cc   :  { %v1026_v35 = vpop.f32.mrf.mxu0  ;;  %v1067_v16 = vpop.f32.mrf.mxu1 }
 0x5cd   :  { %v1478_v17 = vmul.f32 -1.442695, %v1072_v32  ;;  %v1073_v18 = vadd.f32 %v1026_v35, %v171_v34  ;;  %v1075_v58 = vadd.f32 %v1067_v16, %v173_v55 }
 0x5ce   :  { %v1028_v19 = vpop.f32.mrf.mxu0  ;;  %v1069_v20 = vpop.f32.mrf.mxu1 }
 0x5cf   :  { %1673 = vpow2.f32 %v1478_v17  ;;  %v1479_v21 = vmul.f32 -1.442695, %v1073_v18  ;;  %v1480_v33 = vmul.f32 -1.442695, %v1075_v58 }
 0x5d0   :  { %v1029_v52 = vpop.f32.mrf.mxu0  ;;  %v1070_v57 = vpop.f32.mrf.mxu1 }
 0x5d1   :  { %1675 = vpow2.f32 %v1479_v21 }
 0x5d2   :  { %1677 = vpow2.f32 %v1480_v33 }
 0x5dc   :  { %v1674_v37 = vpop.eup %1673 }
 0x5dd   :  { %v1079_v38 = vadd.f32 1.0, %v1674_v37 }
 0x5de   :  { %v1676_v48 = vpop.eup %1675 }
 0x5df   :  { %1679 = vrcp.f32 %v1079_v38  ;;  %v1085_v54 = vadd.f32 1.0, %v1676_v48  ;;  %v1678_v56 = vpop.eup %1677 }
 0x5e0   :  { %1681 = vtanh.f32 %v1074_v41  ;;  %v1092_v39 = vadd.f32 1.0, %v1678_v56 }
 0x5e1   :  { %1683 = vrcp.f32 %v1085_v54 }
 0x5e2   :  { %1685 = vrcp.f32 %v1092_v39 }
 0x5ec   :  { %v1680_v61 = vpop.eup %1679 }
 0x5ed   :  { %v1682_v45 = vpop.eup %1681 }
 0x5ee   :  { %v1684_v62 = vpop.eup %1683  ;;  %v1096_v22 = vmul.f32 %v1682_v45, %v1680_v61 }
 0x5ef   :  { %v1095_v23 = vmul.f32 %v1684_v62, %v2263_v60  ;;  %v1686_v25 = vpop.eup %1685  ;;  %v1743_v60 = vld [vmem:[%s2540_s3 + $0x40] ss:$16 sps:$4 sm:$0xff]  }
 0x5f1   :  { %v2408_v24 = vadd.f32 %v1096_v22, %v1095_v23 }
 0x5f3   :  { %1687 = vtanh.f32 %v2408_v24 }
 0x600   :  { %v1688_v26 = vpop.eup %1687 }
 0x601   :  { %v1099_v29 = vmul.f32 %v1688_v26, %v1686_v25  ;;  %v1754_v25 = vmov 0.0   ;;  %v1347_v26 = vld [vmem:[%s2544_s4 + $0x78] sm:$0xff] }
 0x603   :  { %v1105_v30 = vpack.c.bf16 %v1099_v29, %v1099_v29  ;;  %v1345_v29 = vld [vmem:[%s2544_s4 + $0x68] sm:$0xff] }
 0x605   :  { %1139 = vmatmul.mubr.bf16.vlgmr.msra.gmra.mxu0 %v1105_v30  ;;  %1180 = vmatmul.mubr.bf16.vlgmr.msra.gmra.mxu1 %v1105_v30  ;;  %v1344_v30 = vld [vmem:[%s2544_s4 + $0x60] sm:$0xff] }
 0x606   :  { %1223 = vmatpush1.bf16.msra.mxu0 %v2269_v27  ;;  %1264 = vmatpush1.bf16.msra.mxu1 %v2275_v50  ;;  %v1744_v27 = vld [vmem:[%s2540_s3 + $0x48] ss:$16 sps:$4 sm:$0xff]   ;;  %v1745_v50 = vld [vmem:[%s2540_s3 + $0x24] ss:$16 sps:$4 sm:$0xff]  }
 0x607   :  { %1224 = vmatprep.subr.bf16.mxu0 %v2281_v43  ;;  %1265 = vmatprep.subr.bf16.mxu1 %v2287_v59  ;;  %v1746_v43 = vld [vmem:[%s2540_s3 + $0x2c] ss:$16 sps:$4 sm:$0xff]   ;;  %v1747_v59 = vld [vmem:[%s2540_s3 + $0x20] ss:$16 sps:$4 sm:$0xff]  }
 0x608   :  { %1254 = vmatprep.mubr.bf16.mxu0 %v1753_v1  ;;  %1295 = vmatprep.mubr.bf16.mxu1 %v1753_v1  ;;  %v1742_v1 = vld [vmem:[%s2540_s3 + $0x4c] ss:$16 sps:$4 sm:$0xff]  }
 0x60a   :  { %1225 = vmatpush1.bf16.msra.mxu0 %v2295_v3  ;;  %1266 = vmatpush1.bf16.msra.mxu1 %v2301_v4  ;;  %v1748_v3 = vld [vmem:[%s2540_s3 + $0x28] ss:$16 sps:$4 sm:$0xff]   ;;  %v1749_v4 = vld [vmem:[%s2540_s3 + $0x4] ss:$16 sps:$4 sm:$0xff]  }
 0x60b   :  { %1226 = vmatprep.subr.bf16.mxu0 %v2307_v5  ;;  %1267 = vmatprep.subr.bf16.mxu1 %v2313_v6  ;;  %v1750_v5 = vld [vmem:[%s2540_s3 + $0xc] ss:$16 sps:$4 sm:$0xff]   ;;  %v1751_v6 = vld [vmem:[%s2540_s3] ss:$16 sps:$4 sm:$0xff]  }
 0x60e   :  { %1227 = vmatpush1.bf16.msra.mxu0 %v2319_v7  ;;  %1268 = vmatpush1.bf16.msra.mxu1 %v2325_v8  ;;  %v1752_v7 = vld [vmem:[%s2540_s3 + $0x8] ss:$16 sps:$4 sm:$0xff]   ;;  %v68_v8 = vpop.permute.xlu0 %67 }
 0x60f   :  { %1228 = vmatprep.subr.bf16.mxu0 %v2331_v9  ;;  %1269 = vmatprep.subr.bf16.mxu1 %v2337_v10  ;;  %v120_v9 = vmul.f32 %v2040_v42, %v68_v8  ;;  %v121_v10 = vmul.f32 %v2045_v44, %v68_v8  ;;  %v123_v17 = vmul.f32 %v2055_v53, %v68_v8 }
 0x610   :  { %v122_v21 = vmul.f32 %v2060_v36, %v68_v8  ;;  %v1332_v8 = vld [vmem:[%s2544_s4] sm:$0xff] }
 0x611   :  { %v177_v20 = vadd.f32 %v2058_v63, %v123_v17 }
 0x612   :  { %1229 = vmatpush1.bf16.msra.mxu0 %v2343_v11  ;;  %1270 = vmatpush1.bf16.msra.mxu1 %v2349_v12  ;;  %v174_v11 = vadd.f32 %v2048_v47, %v120_v9  ;;  %v176_v52 = vadd.f32 %v2064_v46, %v122_v21  ;;  %v11_v9 = vstv %s2545_s5 }
 0x613   :  { %1230 = vmatprep.subr.bf16.mxu0 %v2355_v13  ;;  %1271 = vmatprep.subr.bf16.mxu1 %v2361_v14  ;;  %12 = vst [vmem:[#allocation3] sm:$0x1] %v11_v9 }
 0x616   :  { %1231 = vmatpush1.bf16.msra.mxu0 %v2367_v15  ;;  %1272 = vmatpush1.bf16.msra.mxu1 %v2373_v0  ;;  %v175_v15 = vadd.f32 %v2051_v49, %v121_v10  ;;  %v73_v10 = vpop.permute.xlu1 %72 }
 0x617   :  { %1232 = vmatprep.subr.bf16.mxu0 %v2379_v2  ;;  %1273 = vmatprep.subr.bf16.mxu1 %v1742_v1  ;;  %v1343_v1 = vld [vmem:[%s2544_s4 + $0x58] sm:$0xff] }
 0x61a   :  { %1233 = vmatpush1.bf16.msra.mxu0 %v1743_v60  ;;  %1274 = vmatpush1.bf16.msra.mxu1 %v1744_v27  ;;  %v1342_v60 = vld [vmem:[%s2544_s4 + $0x50] sm:$0xff]  ;;  %v1341_v27 = vld [vmem:[%s2544_s4 + $0x48] sm:$0xff] }
 0x61b   :  { %1234 = vmatprep.subr.bf16.mxu0 %v1745_v50  ;;  %1275 = vmatprep.subr.bf16.mxu1 %v1746_v43  ;;  %v1340_v50 = vld [vmem:[%s2544_s4 + $0x40] sm:$0xff]  ;;  %v1339_v43 = vld [vmem:[%s2544_s4 + $0x38] sm:$0xff] }
 0x61e   :  { %1235 = vmatpush1.bf16.msra.mxu0 %v1747_v59  ;;  %1276 = vmatpush1.bf16.msra.mxu1 %v1748_v3  ;;  %v1338_v59 = vld [vmem:[%s2544_s4 + $0x30] sm:$0xff]  ;;  %v1337_v3 = vld [vmem:[%s2544_s4 + $0x28] sm:$0xff] }
 0x61f   :  { %1236 = vmatprep.subr.bf16.mxu0 %v1749_v4  ;;  %1277 = vmatprep.subr.bf16.mxu1 %v1750_v5  ;;  %v1336_v4 = vld [vmem:[%s2544_s4 + $0x20] sm:$0xff]  ;;  %v1335_v5 = vld [vmem:[%s2544_s4 + $0x18] sm:$0xff] }
 0x622   :  { %1237 = vmatpush1.bf16.msra.mxu0 %v1751_v6  ;;  %1278 = vmatpush1.bf16.msra.mxu1 %v1752_v7  ;;  %v1334_v6 = vld [vmem:[%s2544_s4 + $0x10] sm:$0xff]  ;;  %v1333_v7 = vld [vmem:[%s2544_s4 + $0x8] sm:$0xff] }
 0x623   :  { %1505 = vmatprep.subr.mxu0 %v1754_v25 }
 0x6c5   :  { %v1140_v12 = vpop.f32.mrf.mxu0  ;;  %v1181_v13 = vpop.f32.mrf.mxu1 }
 0x6c6   :  { %v1188_v14 = vadd.f32 %v1140_v12, %v174_v11  ;;  %v1190_v51 = vadd.f32 %v1181_v13, %v176_v52  ;;  %v124_v11 = vmul.f32 %v2040_v42, %v73_v10  ;;  %v125_v12 = vmul.f32 %v2045_v44, %v73_v10 }
 0x6c7   :  { %v1142_v0 = vpop.f32.mrf.mxu0  ;;  %v1183_v2 = vpop.f32.mrf.mxu1 }
 0x6c8   :  { %v1481_v31 = vmul.f32 -1.442695, %v1188_v14  ;;  %v1189_v32 = vadd.f32 %v1142_v0, %v175_v15  ;;  %v1191_v40 = vadd.f32 %v1183_v2, %v177_v20  ;;  %v178_v13 = vadd.f32 %v2048_v47, %v124_v11 }
 0x6c9   :  { %v1144_v34 = vpop.f32.mrf.mxu0  ;;  %v1185_v35 = vpop.f32.mrf.mxu1  ;;  %v179_v2 = vadd.f32 %v2051_v49, %v125_v12  ;;  %v126_v47 = vmul.f32 %v2060_v36, %v73_v10 }
 0x6ca   :  { %1689 = vpow2.f32 %v1481_v31  ;;  %v1482_v16 = vmul.f32 -1.442695, %v1189_v32  ;;  %v1483_v57 = vmul.f32 -1.442695, %v1191_v40 }
 0x6cb   :  { %v1145_v18 = vpop.f32.mrf.mxu0  ;;  %v1186_v19 = vpop.f32.mrf.mxu1  ;;  %v180_v49 = vadd.f32 %v2064_v46, %v126_v47 }
 0x6cc   :  { %1691 = vpow2.f32 %v1482_v16  ;;  %v127_v19 = vmul.f32 %v2055_v53, %v73_v10 }
 0x6cd   :  { %1693 = vpow2.f32 %v1483_v57 }
 0x6ce   :  { %v181_v44 = vadd.f32 %v2058_v63, %v127_v19 }
 0x6d7   :  { %v1690_v55 = vpop.eup %1689 }
 0x6d8   :  { %v1195_v58 = vadd.f32 1.0, %v1690_v55 }
 0x6d9   :  { %v1692_v28 = vpop.eup %1691 }
 0x6da   :  { %1695 = vrcp.f32 %v1195_v58  ;;  %v1201_v33 = vadd.f32 1.0, %v1692_v28  ;;  %v1694_v37 = vpop.eup %1693 }
 0x6db   :  { %1697 = vtanh.f32 %v1190_v51  ;;  %v1208_v54 = vadd.f32 1.0, %v1694_v37 }
 0x6dc   :  { %1699 = vrcp.f32 %v1201_v33 }
 0x6dd   :  { %1701 = vrcp.f32 %v1208_v54 }
 0x6e7   :  { %v1696_v41 = vpop.eup %1695 }
 0x6e8   :  { %v1698_v38 = vpop.eup %1697 }
 0x6e9   :  { %v1700_v48 = vpop.eup %1699  ;;  %v1212_v56 = vmul.f32 %v1698_v38, %v1696_v41 }
 0x6ea   :  { %v1211_v61 = vmul.f32 %v1700_v48, %v2408_v24  ;;  %v1702_v62 = vpop.eup %1701  ;;  %v1346_v24 = vld [vmem:[%s2544_s4 + $0x70] sm:$0xff] }
 0x6ec   :  { %v2474_v45 = vadd.f32 %v1212_v56, %v1211_v61  ;;  %v1487_v56 = vld [vmem:[#allocation3] ss:$0 sm:$0xff] }
 0x6ee   :  { %1703 = vtanh.f32 %v2474_v45 }
 0x6fb   :  { %v1704_v39 = vpop.eup %1703 }
 0x6fc   :  { %v1215_v22 = vmul.f32 %v1704_v39, %v1702_v62 }
 0x6fe   :  { %v1221_v23 = vpack.c.bf16 %v1215_v22, %v1215_v22 }
 0x700   :  { %1255 = vmatmul.mubr.bf16.vlgmr.msra.gmra.mxu0 %v1221_v23  ;;  %1296 = vmatmul.mubr.bf16.vlgmr.msra.gmra.mxu1 %v1221_v23 }
 0x701   :  { %1506 = vmatpush3.msra.mxu0 %v1347_v26  ;;  %1537 = vmatprep.mubr.msk.f32.mxu0 %vm1755_vm0, %v1754_v25 }
 0x702   :  { %1507 = vmatprep.subr.mxu0 %v1754_v25 }
 0x703   :  { %1508 = vmatpush3.msra.mxu0 %v1346_v24 }
 0x704   :  { %1509 = vmatprep.subr.mxu0 %v1754_v25 }
 0x705   :  { %1510 = vmatpush3.msra.mxu0 %v1345_v29 }
 0x706   :  { %1511 = vmatprep.subr.mxu0 %v1754_v25 }
 0x707   :  { %1512 = vmatpush3.msra.mxu0 %v1344_v30 }
 0x708   :  { %1513 = vmatprep.subr.mxu0 %v1754_v25 }
 0x709   :  { %1514 = vmatpush3.msra.mxu0 %v1343_v1 }
 0x70a   :  { %1515 = vmatprep.subr.mxu0 %v1754_v25 }
 0x70b   :  { %1516 = vmatpush3.msra.mxu0 %v1342_v60 }
 0x70c   :  { %1517 = vmatprep.subr.mxu0 %v1754_v25 }
 0x70d   :  { %1518 = vmatpush3.msra.mxu0 %v1341_v27 }
 0x70e   :  { %1519 = vmatprep.subr.mxu0 %v1754_v25 }
 0x70f   :  { %1520 = vmatpush3.msra.mxu0 %v1340_v50 }
 0x710   :  { %1521 = vmatprep.subr.mxu0 %v1754_v25 }
 0x711   :  { %1522 = vmatpush3.msra.mxu0 %v1339_v43 }
 0x712   :  { %1523 = vmatprep.subr.mxu0 %v1754_v25 }
 0x713   :  { %1524 = vmatpush3.msra.mxu0 %v1338_v59 }
 0x714   :  { %1525 = vmatprep.subr.mxu0 %v1754_v25 }
 0x715   :  { %1526 = vmatpush3.msra.mxu0 %v1337_v3 }
 0x716   :  { %1527 = vmatprep.subr.mxu0 %v1754_v25 }
 0x717   :  { %1528 = vmatpush3.msra.mxu0 %v1336_v4 }
 0x718   :  { %1529 = vmatprep.subr.mxu0 %v1754_v25 }
 0x719   :  { %1530 = vmatpush3.msra.mxu0 %v1335_v5 }
 0x71a   :  { %1531 = vmatprep.subr.mxu0 %v1754_v25 }
 0x71b   :  { %1532 = vmatpush3.msra.mxu0 %v1334_v6 }
 0x71c   :  { %1533 = vmatprep.subr.mxu0 %v1754_v25 }
 0x71d   :  { %1534 = vmatpush3.msra.mxu0 %v1333_v7 }
 0x71e   :  { %1535 = vmatprep.subr.mxu0 %v1754_v25 }
 0x71f   :  { %1536 = vmatpush3.msra.mxu0 %v1332_v8 }
 0x7c0   :  { %v1256_v14 = vpop.f32.mrf.mxu0  ;;  %v1297_v15 = vpop.f32.mrf.mxu1 }
 0x7c1   :  { %v1304_v0 = vadd.f32 %v1256_v14, %v178_v13  ;;  %v1306_v57 = vadd.f32 %v1297_v15, %v180_v49 }
 0x7c2   :  { %v1258_v31 = vpop.f32.mrf.mxu0  ;;  %v1299_v32 = vpop.f32.mrf.mxu1 }
 0x7c3   :  { %v1484_v34 = vmul.f32 -1.442695, %v1304_v0  ;;  %v1305_v35 = vadd.f32 %v1258_v31, %v179_v2  ;;  %v1307_v21 = vadd.f32 %v1299_v32, %v181_v44 }
 0x7c4   :  { %v1260_v16 = vpop.f32.mrf.mxu0  ;;  %v1301_v17 = vpop.f32.mrf.mxu1 }
 0x7c5   :  { %1705 = vpow2.f32 %v1484_v34  ;;  %v1485_v18 = vmul.f32 -1.442695, %v1305_v35  ;;  %v1486_v40 = vmul.f32 -1.442695, %v1307_v21 }
 0x7c6   :  { %v1261_v42 = vpop.f32.mrf.mxu0  ;;  %v1302_v20 = vpop.f32.mrf.mxu1 }
 0x7c7   :  { %1707 = vpow2.f32 %v1485_v18 }
 0x7c8   :  { %1709 = vpow2.f32 %v1486_v40 }
 0x7d2   :  { %v1706_v52 = vpop.eup %1705 }
 0x7d3   :  { %v1311_v55 = vadd.f32 1.0, %v1706_v52 }
 0x7d4   :  { %v1708_v51 = vpop.eup %1707 }
 0x7d5   :  { %1711 = vrcp.f32 %v1311_v55  ;;  %v1317_v58 = vadd.f32 1.0, %v1708_v51  ;;  %v1710_v53 = vpop.eup %1709 }
 0x7d6   :  { %1713 = vtanh.f32 %v1306_v57  ;;  %v1324_v63 = vadd.f32 1.0, %v1710_v53 }
 0x7d7   :  { %1715 = vrcp.f32 %v1317_v58 }
 0x7d8   :  { %1717 = vrcp.f32 %v1324_v63 }
 0x7e2   :  { %v1712_v28 = vpop.eup %1711 }
 0x7e3   :  { %v1714_v33 = vpop.eup %1713 }
 0x7e4   :  { %v1716_v37 = vpop.eup %1715  ;;  %v1328_v41 = vmul.f32 %v1714_v33, %v1712_v28 }
 0x7e5   :  { %v1327_v36 = vmul.f32 %v1716_v37, %v2474_v45  ;;  %v1718_v46 = vpop.eup %1717 }
 0x7e7   :  { %v1329_v38 = vadd.f32 %v1328_v41, %v1327_v36 }
 0x7e9   :  { %1719 = vtanh.f32 %v1329_v38 }
 0x7f6   :  { %v1720_v48 = vpop.eup %1719 }
 0x7f7   :  { %v1331_v54 = vmul.f32 %v1720_v48, %v1718_v46 }
 0x7f9   :  { %1538 = vmatmul.mubr.f32.vlgmr.msra.gmra.mxu0 %v1331_v54 }
 0x8b9   :  { %v1421_v61 = vpop.f32.mrf.mxu0 }
 0x8ba   :  { %v1422_v62 = vadd.f32 %v1487_v56, %v1421_v61 }
 0x8bb   :  { %v1539_v39 = vpop.f32.mrf.mxu0 }
 0x8bc   :  { %1426 = vst.msk [vmem:[%s2546_s6] sm:$0xff] %vm1425_vm1, %v1422_v62 }

</bundles_post_ra>
